<compile_context>
chip_gen: v7x
topology: tpu7x:2x2x1
jax: 0.10.0
libtpu: 0.0.40
codegen_flags: <defaults>
</compile_context>

<pallas_src>
import functools

import jax
import jax.numpy as jnp
from jax.experimental import pallas as pl
from jax.experimental.pallas import tpu as pltpu

FILTERS = 128          # channels (lane-aligned)
KERNEL_SIZE = 3
DILATION = 1
LN_EPS = 1e-5          # torch.nn.LayerNorm default
MAX_TILE_L = 256       # sequence tile (rows per grid step)


def _pick_tile(L, max_tile=MAX_TILE_L):
    """Largest TL <= max_tile that divides L and is a multiple of 8; else whole L."""
    if L <= max_tile:
        return L
    for tl in range(max_tile, 7, -8):
        if tl % 8 == 0 and L % tl == 0:
            return tl
    return L


def _rgc_kernel(xw_ref, w_ref, b_ref, g_ref, bt_ref, alpha_ref, o_ref,
                *, kernel_size, dilation, pad, tile_l, filters):
    """One (batch, L-tile) pair per grid step.

    xw_ref   : (1, 1, TL + 2*pad, C)  haloed window of the (zero-padded) input
    w_ref    : (K, C, 2C)             per-tap matmul weights (bf16)
    b_ref    : (1, 2C)                conv bias (f32)
    g_ref    : (1, C)                 layernorm gamma
    bt_ref   : (1, C)                 layernorm beta
    alpha_ref: (1, 1) in SMEM         residual gate scalar
    o_ref    : (1, TL, C)
    """
    C = filters
    TL = tile_l

    xw = xw_ref[0, 0]                         # (TL + 2*pad, C) f32, aligned full read
    xw_bf = xw.astype(jnp.bfloat16)           # cast once for the MXU

    # ---- dilated conv1d as K shifted matmuls (bf16 MXU, f32 accumulate) ----
    acc = jnp.zeros((TL, 2 * C), jnp.float32)
    for k in range(kernel_size):              # static unroll (K small)
        xs = xw_bf[k * dilation: k * dilation + TL, :]       # (TL, C) bf16
        acc = acc + jnp.dot(xs, w_ref[k], preferred_element_type=jnp.float32)
    acc = acc + b_ref[...]                    # (1, 2C) broadcast

    # ---- gating (f32 VPU/EUP) ----
    lin = acc[:, :C]
    gate = jax.nn.sigmoid(acc[:, C:])
    h = lin * gate

    # ---- layernorm over channels, single-pass stats ----
    mu = jnp.mean(h, axis=-1, keepdims=True)
    ms = jnp.mean(h * h, axis=-1, keepdims=True)
    var = ms - mu * mu
    hn = (h - mu) * jax.lax.rsqrt(var + LN_EPS)
    hn = hn * g_ref[...] + bt_ref[...]

    # ---- residual: inputs + alpha * outputs (residual rows come from the window) ----
    alpha = alpha_ref[0, 0]
    resid = xw[pad: pad + TL, :]              # original (unpadded) input rows, f32
    o_ref[0] = (resid + alpha * hn).astype(o_ref.dtype)


def residual_gated_conv1d(x, weight, bias, gamma, beta, alpha,
                          *, kernel_size=KERNEL_SIZE, dilation=DILATION,
                          max_tile=MAX_TILE_L):
    """x: (B, L, C) f32; weight: (2C, C, K) torch Conv1d layout (out, in, k)."""
    B, L, C = x.shape
    assert kernel_size % 2 == 1, "same-length padding requires odd kernel_size"
    pad = dilation * (kernel_size - 1) // 2

    TL = _pick_tile(L, max_tile)
    nL = L // TL
    TLh = TL + 2 * pad

    # Haloed, overlapping windows of the zero-padded input: (B, nL, TLh, C).
    # Window j covers padded rows [j*TL, j*TL + TLh); this is the only extra
    # host pass (replaces the old jnp.pad-only pass) and enables clean L tiling.
    x_pad = jnp.pad(x, ((0, 0), (pad, pad), (0, 0)))
    win_idx = jnp.arange(nL)[:, None] * TL + jnp.arange(TLh)[None, :]
    x_win = x_pad[:, win_idx, :]                                   # (B, nL, TLh, C)

    w_stack = jnp.transpose(weight, (2, 1, 0)).astype(jnp.bfloat16)  # (K, C, 2C)
    bias2 = bias.reshape(1, 2 * C).astype(jnp.float32)
    gamma2 = gamma.reshape(1, C).astype(jnp.float32)
    beta2 = beta.reshape(1, C).astype(jnp.float32)
    alpha2 = alpha.reshape(1, 1).astype(jnp.float32)

    kern = functools.partial(_rgc_kernel, kernel_size=kernel_size,
                             dilation=dilation, pad=pad, tile_l=TL, filters=C)

    return pl.pallas_call(
        kern,
        out_shape=jax.ShapeDtypeStruct((B, L, C), x.dtype),
        grid=(B, nL),
        in_specs=[
            pl.BlockSpec((1, 1, TLh, C), lambda b, j: (b, j, 0, 0)),
            pl.BlockSpec((kernel_size, C, 2 * C), lambda b, j: (0, 0, 0)),
            pl.BlockSpec((1, 2 * C), lambda b, j: (0, 0)),
            pl.BlockSpec((1, C), lambda b, j: (0, 0)),
            pl.BlockSpec((1, C), lambda b, j: (0, 0)),
            pl.BlockSpec(memory_space=pltpu.MemorySpace.SMEM),      # alpha scalar
        ],
        out_specs=pl.BlockSpec((1, TL, C), lambda b, j: (b, j, 0)),
        compiler_params=pltpu.CompilerParams(
            dimension_semantics=("parallel", "parallel")),
    )(x_win, w_stack, bias2, gamma2, beta2, alpha2)


def _reference(x, weight, bias, gamma, beta, alpha, kernel_size, dilation):
    """Pure-JAX (f32) reference mirroring the PyTorch forward."""
    C = x.shape[-1]
    pad = dilation * (kernel_size - 1) // 2
    xc = jnp.transpose(x, (0, 2, 1))                               # (B, C, L)
    out = jax.lax.conv_general_dilated(
        xc, weight, window_strides=(1,), padding=[(pad, pad)],
        rhs_dilation=(dilation,), dimension_numbers=('NCH', 'OIH', 'NCH'))
    out = out + bias[None, :, None]
    out = jnp.transpose(out, (0, 2, 1))                            # (B, L, 2C)
    gate = jax.nn.sigmoid(out[..., C:])
    h = out[..., :C] * gate
    mu = jnp.mean(h, -1, keepdims=True)
    var = jnp.mean((h - mu) ** 2, -1, keepdims=True)
    hn = (h - mu) / jnp.sqrt(var + LN_EPS) * gamma + beta
    return x + alpha * hn


if __name__ == "__main__":
    B, L, C, K = 2, 1024, FILTERS, KERNEL_SIZE   # grid = (2, 4) L-tiles of 256

    key = jax.random.PRNGKey(0)
    kx, kw, kb, ka = jax.random.split(key, 4)

    x = jax.random.normal(kx, (B, L, C), dtype=jnp.float32)
    # Conv1d(filters, 2*filters, K) weights in torch layout (out, in, k)
    weight = jax.random.normal(kw, (2 * C, C, K), dtype=jnp.float32) * 0.05
    bias = jax.random.normal(kb, (2 * C,), dtype=jnp.float32) * 0.05
    # LayerNorm affine (torch default init: gamma=1, beta=0)
    gamma = jnp.ones((C,), dtype=jnp.float32)
    beta = jnp.zeros((C,), dtype=jnp.float32)
    # torch init is alpha=0 (output == input); use a nonzero deterministic value
    # so the whole path is exercised.
    alpha = jax.random.normal(ka, (1,), dtype=jnp.float32) * 0.5

    out = residual_gated_conv1d(x, weight, bias, gamma, beta, alpha)
    out = jax.block_until_ready(out)

    ref = _reference(x, weight, bias, gamma, beta, alpha, K, DILATION)
    assert out.shape == (B, L, C)
    # bf16 MXU operands -> loosened tolerance vs the all-f32 reference.
    assert jnp.allclose(out, ref, atol=3e-2, rtol=3e-2), "mismatch vs reference"

    print("KERNEL_OK")
</pallas_src>

<mosaic_0001>
module attributes {stable_mosaic.version = 11 : i64} {
  func.func @_rgc_kernel(%arg0: i32, %arg1: i32, %arg2: memref<1x1x258x128xf32, #tpu.memory_space<vmem>>, %arg3: memref<3x128x256xbf16, #tpu.memory_space<vmem>>, %arg4: memref<1x256xf32, #tpu.memory_space<vmem>>, %arg5: memref<1x128xf32, #tpu.memory_space<vmem>>, %arg6: memref<1x128xf32, #tpu.memory_space<vmem>>, %arg7: memref<1x1xf32, #tpu.memory_space<smem>>, %arg8: memref<1x256x128xf32, #tpu.memory_space<vmem>>) attributes {dimension_semantics = [#tpu.dimension_semantics<parallel>, #tpu.dimension_semantics<parallel>], iteration_bounds = array<i64: 2, 4>, scalar_prefetch = 0 : i64, scratch_operands = 0 : i64, tpu.core_type = #tpu.core_type<tc>, window_params = [{transform_indices = @transform_0, window_bounds = array<i64: 1, 1, 258, 128>}, {pipeline_mode = #tpu.pipeline_mode<synchronous>, transform_indices = @transform_1, window_bounds = array<i64: 3, 128, 256>}, {pipeline_mode = #tpu.pipeline_mode<synchronous>, transform_indices = @transform_2, window_bounds = array<i64: 1, 256>}, {pipeline_mode = #tpu.pipeline_mode<synchronous>, transform_indices = @transform_3, window_bounds = array<i64: 1, 128>}, {pipeline_mode = #tpu.pipeline_mode<synchronous>, transform_indices = @transform_4, window_bounds = array<i64: 1, 128>}, {transform_indices = @transform_5, window_bounds = array<i64: 1, 1>}, {transform_indices = @transform_6, window_bounds = array<i64: 1, 256, 128>}]} {
    %c0 = arith.constant 0 : index
    %c0_0 = arith.constant 0 : index
    %c0_1 = arith.constant 0 : index
    %c0_2 = arith.constant 0 : index
    %0 = vector.load %arg2[%c0, %c0_0, %c0_1, %c0_2] : memref<1x1x258x128xf32, #tpu.memory_space<vmem>>, vector<1x1x258x128xf32>
    %1 = vector.shape_cast %0 : vector<1x1x258x128xf32> to vector<258x128xf32>
    %2 = arith.truncf %1 : vector<258x128xf32> to vector<258x128xbf16>
    %cst = arith.constant 0.000000e+00 : f32
    %3 = vector.broadcast %cst : f32 to vector<256x256xf32>
    %4 = vector.extract_strided_slice %2 {offsets = [0, 0], sizes = [256, 128], strides = [1, 1]} : vector<258x128xbf16> to vector<256x128xbf16>
    %c0_3 = arith.constant 0 : index
    %c0_4 = arith.constant 0 : index
    %c0_5 = arith.constant 0 : index
    %5 = vector.load %arg3[%c0_3, %c0_4, %c0_5] : memref<3x128x256xbf16, #tpu.memory_space<vmem>>, vector<1x128x256xbf16>
    %6 = vector.shape_cast %5 : vector<1x128x256xbf16> to vector<128x256xbf16>
    %cst_6 = arith.constant dense<0.000000e+00> : vector<256x256xf32>
    %7 = tpu.matmul %4, %6, %cst_6 {dimension_numbers = #tpu.dot_dimension_numbers<[1], [0], [0], [1], [0, 0, 1, 1], [], []>} : vector<256x128xbf16>, vector<128x256xbf16>, vector<256x256xf32> -> vector<256x256xf32>
    %8 = arith.addf %3, %7 : vector<256x256xf32>
    %9 = vector.extract_strided_slice %2 {offsets = [1, 0], sizes = [256, 128], strides = [1, 1]} : vector<258x128xbf16> to vector<256x128xbf16>
    %c1 = arith.constant 1 : index
    %c0_7 = arith.constant 0 : index
    %c0_8 = arith.constant 0 : index
    %10 = vector.load %arg3[%c1, %c0_7, %c0_8] : memref<3x128x256xbf16, #tpu.memory_space<vmem>>, vector<1x128x256xbf16>
    %11 = vector.shape_cast %10 : vector<1x128x256xbf16> to vector<128x256xbf16>
    %cst_9 = arith.constant dense<0.000000e+00> : vector<256x256xf32>
    %12 = tpu.matmul %9, %11, %cst_9 {dimension_numbers = #tpu.dot_dimension_numbers<[1], [0], [0], [1], [0, 0, 1, 1], [], []>} : vector<256x128xbf16>, vector<128x256xbf16>, vector<256x256xf32> -> vector<256x256xf32>
    %13 = arith.addf %8, %12 : vector<256x256xf32>
    %14 = vector.extract_strided_slice %2 {offsets = [2, 0], sizes = [256, 128], strides = [1, 1]} : vector<258x128xbf16> to vector<256x128xbf16>
    %c2 = arith.constant 2 : index
    %c0_10 = arith.constant 0 : index
    %c0_11 = arith.constant 0 : index
    %15 = vector.load %arg3[%c2, %c0_10, %c0_11] : memref<3x128x256xbf16, #tpu.memory_space<vmem>>, vector<1x128x256xbf16>
    %16 = vector.shape_cast %15 : vector<1x128x256xbf16> to vector<128x256xbf16>
    %cst_12 = arith.constant dense<0.000000e+00> : vector<256x256xf32>
    %17 = tpu.matmul %14, %16, %cst_12 {dimension_numbers = #tpu.dot_dimension_numbers<[1], [0], [0], [1], [0, 0, 1, 1], [], []>} : vector<256x128xbf16>, vector<128x256xbf16>, vector<256x256xf32> -> vector<256x256xf32>
    %18 = arith.addf %13, %17 : vector<256x256xf32>
    %c0_13 = arith.constant 0 : index
    %c0_14 = arith.constant 0 : index
    %19 = vector.load %arg4[%c0_13, %c0_14] : memref<1x256xf32, #tpu.memory_space<vmem>>, vector<1x256xf32>
    %20 = vector.broadcast %19 : vector<1x256xf32> to vector<256x256xf32>
    %21 = arith.addf %18, %20 : vector<256x256xf32>
    %22 = vector.extract_strided_slice %21 {offsets = [0, 0], sizes = [256, 128], strides = [1, 1]} : vector<256x256xf32> to vector<256x128xf32>
    %23 = vector.extract_strided_slice %21 {offsets = [0, 128], sizes = [256, 128], strides = [1, 1]} : vector<256x256xf32> to vector<256x128xf32>
    %24 = arith.negf %23 : vector<256x128xf32>
    %25 = math.exp %24 : vector<256x128xf32>
    %cst_15 = arith.constant 1.000000e+00 : f32
    %26 = vector.broadcast %cst_15 : f32 to vector<256x128xf32>
    %27 = arith.addf %26, %25 : vector<256x128xf32>
    %28 = arith.divf %26, %27 : vector<256x128xf32>
    %29 = arith.mulf %22, %28 : vector<256x128xf32>
    %cst_16 = arith.constant dense<0.000000e+00> : vector<256xf32>
    %30 = vector.multi_reduction <add>, %29, %cst_16 [1] : vector<256x128xf32> to vector<256xf32>
    %31 = vector.shape_cast %30 : vector<256xf32> to vector<256x1xf32>
    %cst_17 = arith.constant 1.280000e+02 : f32
    %32 = vector.broadcast %cst_17 : f32 to vector<256x1xf32>
    %33 = arith.divf %31, %32 : vector<256x1xf32>
    %34 = arith.mulf %29, %29 : vector<256x128xf32>
    %cst_18 = arith.constant dense<0.000000e+00> : vector<256xf32>
    %35 = vector.multi_reduction <add>, %34, %cst_18 [1] : vector<256x128xf32> to vector<256xf32>
    %36 = vector.shape_cast %35 : vector<256xf32> to vector<256x1xf32>
    %cst_19 = arith.constant 1.280000e+02 : f32
    %37 = vector.broadcast %cst_19 : f32 to vector<256x1xf32>
    %38 = arith.divf %36, %37 : vector<256x1xf32>
    %39 = arith.mulf %33, %33 : vector<256x1xf32>
    %40 = arith.subf %38, %39 : vector<256x1xf32>
    %41 = vector.broadcast %33 : vector<256x1xf32> to vector<256x128xf32>
    %42 = arith.subf %29, %41 : vector<256x128xf32>
    %cst_20 = arith.constant 9.99999974E-6 : f32
    %43 = vector.broadcast %cst_20 : f32 to vector<256x1xf32>
    %44 = arith.addf %40, %43 : vector<256x1xf32>
    %45 = math.rsqrt %44 : vector<256x1xf32>
    %46 = vector.broadcast %45 : vector<256x1xf32> to vector<256x128xf32>
    %47 = arith.mulf %42, %46 : vector<256x128xf32>
    %c0_21 = arith.constant 0 : index
    %c0_22 = arith.constant 0 : index
    %48 = vector.load %arg5[%c0_21, %c0_22] : memref<1x128xf32, #tpu.memory_space<vmem>>, vector<1x128xf32>
    %49 = vector.broadcast %48 : vector<1x128xf32> to vector<256x128xf32>
    %50 = arith.mulf %47, %49 : vector<256x128xf32>
    %c0_23 = arith.constant 0 : index
    %c0_24 = arith.constant 0 : index
    %51 = vector.load %arg6[%c0_23, %c0_24] : memref<1x128xf32, #tpu.memory_space<vmem>>, vector<1x128xf32>
    %52 = vector.broadcast %51 : vector<1x128xf32> to vector<256x128xf32>
    %53 = arith.addf %50, %52 : vector<256x128xf32>
    %c0_25 = arith.constant 0 : index
    %c0_26 = arith.constant 0 : index
    %54 = memref.load %arg7[%c0_25, %c0_26] : memref<1x1xf32, #tpu.memory_space<smem>>
    %55 = vector.extract_strided_slice %1 {offsets = [1, 0], sizes = [256, 128], strides = [1, 1]} : vector<258x128xf32> to vector<256x128xf32>
    %56 = vector.broadcast %54 : f32 to vector<256x128xf32>
    %57 = arith.mulf %56, %53 : vector<256x128xf32>
    %58 = arith.addf %55, %57 : vector<256x128xf32>
    %c0_27 = arith.constant 0 : index
    %c0_28 = arith.constant 0 : index
    %c0_29 = arith.constant 0 : index
    %59 = vector.load %arg8[%c0_27, %c0_28, %c0_29] : memref<1x256x128xf32, #tpu.memory_space<vmem>>, vector<1x256x128xf32>
    %60 = vector.shape_cast %59 : vector<1x256x128xf32> to vector<256x128xf32>
    %61 = vector.shape_cast %58 : vector<256x128xf32> to vector<1x256x128xf32>
    tpu.vector_store %arg8[%c0_27, %c0_28, %c0_29], %61 {strides = array<i32>} : memref<1x256x128xf32, #tpu.memory_space<vmem>>, vector<1x256x128xf32>,
    return
  }
  func.func @transform_0(%arg0: i32, %arg1: i32) -> (i32, i32, i32, i32) {
    %c0_i32 = arith.constant 0 : i32
    %c0_i32_0 = arith.constant 0 : i32
    %c0_i32_1 = arith.constant 0 : i32
    return %arg0, %arg1, %c0_i32, %c0_i32_0 : i32, i32, i32, i32
  }
  func.func @transform_1(%arg0: i32, %arg1: i32) -> (i32, i32, i32) {
    %c0_i32 = arith.constant 0 : i32
    %c0_i32_0 = arith.constant 0 : i32
    %c0_i32_1 = arith.constant 0 : i32
    %c0_i32_2 = arith.constant 0 : i32
    return %c0_i32, %c0_i32_0, %c0_i32_1 : i32, i32, i32
  }
  func.func @transform_2(%arg0: i32, %arg1: i32) -> (i32, i32) {
    %c0_i32 = arith.constant 0 : i32
    %c0_i32_0 = arith.constant 0 : i32
    %c0_i32_1 = arith.constant 0 : i32
    return %c0_i32, %c0_i32_0 : i32, i32
  }
  func.func @transform_3(%arg0: i32, %arg1: i32) -> (i32, i32) {
    %c0_i32 = arith.constant 0 : i32
    %c0_i32_0 = arith.constant 0 : i32
    %c0_i32_1 = arith.constant 0 : i32
    return %c0_i32, %c0_i32_0 : i32, i32
  }
  func.func @transform_4(%arg0: i32, %arg1: i32) -> (i32, i32) {
    %c0_i32 = arith.constant 0 : i32
    %c0_i32_0 = arith.constant 0 : i32
    %c0_i32_1 = arith.constant 0 : i32
    return %c0_i32, %c0_i32_0 : i32, i32
  }
  func.func @transform_5(%arg0: i32, %arg1: i32) -> (i32, i32) {
    %c0_i32 = arith.constant 0 : i32
    %c0_i32_0 = arith.constant 0 : i32
    %c0_i32_1 = arith.constant 0 : i32
    return %c0_i32, %c0_i32_0 : i32, i32
  }
  func.func @transform_6(%arg0: i32, %arg1: i32) -> (i32, i32, i32) {
    %c0_i32 = arith.constant 0 : i32
    %c0_i32_0 = arith.constant 0 : i32
    return %arg0, %arg1, %c0_i32 : i32, i32, i32
  }
}

</mosaic_0001>

<bundles_post_ra>
// kernel: tpu_custom_call.1
= control target key start
LH: loop header
LB: loop body
LE: loop exit
PB: predicated region body
PF: predicated region fallthrough
CT: control target
= control target key end

     0   :  { %s4765_s0 = inlined_call_operand.vmem [shape: f32[2,4,258,128], index: 0, kind: input, shape index: {}]   ;;  %s4766_s1 = inlined_call_operand.vmem [shape: bf16[3,128,256], index: 1, kind: input, shape index: {}]   ;;  %s4767_s2 = inlined_call_operand.vmem [shape: f32[1,256], index: 2, kind: input, shape index: {}]   ;;  %s4768_s3 = inlined_call_operand.vmem [shape: f32[1,128], index: 3, kind: input, shape index: {}]   ;;  %s4769_s4 = inlined_call_operand.vmem [shape: f32[1,128], index: 4, kind: input, shape index: {}]   ;;  %s4770_s5 = inlined_call_operand.<no memory space> [shape: f32[1,1], index: 5, kind: input, shape index: {}]   ;;  %s4771_s6 = inlined_call_operand.hbm [shape: f32[2,1024,128], index: 6, kind: output, shape index: {}]  }
   0x1   :  { %11 = sst [smem:[#allocation2]] %s4770_s5 }
   0x2   :  { %12 = vsyncpa [#allocation4], 0 }
   0x3   :  { %14 = vsyncpa [#allocation4 + $0x1], 0  ;;  %s3389_s23 = smov 0   ;;  %s3391_s24 = smov 0  }
   0x4   :  { %s3393_s25 = smov 0   ;;  %s3395_s26 = smov 0  }
   0x5   :  { %s3397_s27 = smov 0   ;;  %s3399_s28 = smov 0  }
   0x6   :  { %s3401_s29 = smov 0   ;;  %s3403_s30 = smov 0  }
   0x7 LB: > { %s2605_s5 = sadd.s32 4294967295, %s3345_s30   ;;  %s2606_s7 = sadd.s32 4294967294, %s3345_s30   ;;  %s3345_s30 = sphi %s3403_s30, %s20_s30   ;;  %s3341_s29 = sphi %s3401_s29, %s4780_s29   ;;  %s3337_s28 = sphi %s3399_s28, %s4779_s28   ;;  %s3333_s27 = sphi %s3397_s27, %s4778_s27   ;;  %s3329_s26 = sphi %s3395_s26, %s4777_s26   ;;  %s3325_s25 = sphi %s3393_s25, %s4776_s25   ;;  %s3321_s24 = sphi %s3391_s24, %s4775_s24   ;;  %s3317_s23 = sphi %s3389_s23, %s4774_s23  }
   0x8   : > { %s29_s8 = sadd.s32 1, %s3337_s28  ;;  %s32_s9 = sadd.s32 1, %s3341_s29 }
   0x9   : > { %p30_p0 = scmp.ge.s32.totalorder %s29_s8, 4  ;;  %p184_p1 = scmp.ne.s32.totalorder %s3325_s25, %s3321_s24 }
   0xa   : > { %p185_p2 = scmp.eq.s32.totalorder %s2605_s5, 7  ;;  %p190_p5 = scmp.ne.s32.totalorder %s3321_s24, %s3317_s23 }
   0xb   : > { %s4782_s8 = smov (%p30_p0, %s29_s8), 0  ;;  %s4784_s9 = smov (!%p30_p0, %s32_s9), %s3341_s29 }
   0xc   : > { %s170_s10 = ssub.s32 %s3337_s28, %s4782_s8  ;;  %p3440_p3 = por %p185_p2, %p184_p1 }
   0xd   : > { %p34_p4 = scmp.ge.s32.totalorder %s4784_s9, 2  ;;  %p191_p6 = scmp.eq.s32.totalorder %s2606_s7, 7 }
   0xe   : > { %p2609_p7 = scmp.ge.s32.totalorder %s3345_s30, 1  ;;  %p236_p9 = scmp.lt.s32.totalorder %s3345_s30, 9 }
   0xf   : > { %s4786_s9 = smov (%p34_p4, %s4784_s9), 0  ;;  %p3449_p8 = por %p191_p6, %p190_p5 }
  0x10   : > { %s169_s13 = ssub.s32 %s3341_s29, %s4786_s9  ;;  %s174_s14 = sadd.s32 1, %s3325_s25 }
  0x11   : > { %s171_s15 = sor.u32 %s170_s10, %s169_s13  ;;  %p237_p10 = pnand %p2609_p7, %p236_p9 }
  0x12   : > { %p172_p11 = scmp.eq.s32.totalorder %s171_s15, 0  ;;  %v2952_v0 = vld [vmem:[%s4766_s1 + $0x84] ss:$8 sps:$4 sm:$0xff] (!%p237_p10)   ;;  %p270_p12 = scmp.lt.s32.totalorder (!%p237_p10), %s3333_s27, 1  ;;  %v3347_v2 = vmov (!%p237_p10), 0   ;;  %vm1093_vm0 = vcmask (!%p237_p10), 1046528  }
  0x13   : > { %240 = sbr.rel (%p237_p10) target bundleno = 677 (0x2a5), region = 44  ;;  %v3467_v1 = vld [vmem:[%s4766_s1 + $0x4] ss:$8 sps:$4 sm:$0xff] (!%p237_p10)   ;;  %625 = vmatprep.mubr.bf16.mxu1 (!%p237_p10), %v3347_v2  ;;  %898 = vmatprep.mubr.bf16.mxu0 (!%p237_p10), %v3347_v2  ;;  %p272_p13 = scmp.lt.s32.totalorder (!%p237_p10), %s3329_s26, 3  ;;  %v2956_v3 = vld [vmem:[%s4766_s1 + $0x80] ss:$8 sps:$4 sm:$0xff] (!%p237_p10)  }
  0x14   : > { %s3458_s16 = scalar_select %p172_p11, %s3325_s25, %s174_s14  }
  0x15   : > { %593 = vmatprep.subr.bf16.mxu1 (!%p237_p10), %v2952_v0  ;;  %v3478_v4 = vld [vmem:[%s4766_s1] ss:$8 sps:$4 sm:$0xff] (!%p237_p10)   ;;  %866 = vmatprep.subr.bf16.mxu0 (!%p237_p10), %v3467_v1  ;;  %v2958_v5 = vld [vmem:[%s4766_s1 + $0x94] ss:$8 sps:$4 sm:$0xff] (!%p237_p10)   ;;  %v2962_v7 = vld [vmem:[%s4766_s1 + $0x90] ss:$8 sps:$4 sm:$0xff] (!%p237_p10)  }
  0x16   : > { %594 = vmatpush1.bf16.msra.mxu1 (!%p237_p10), %v2956_v3  ;;  %867 = vmatpush1.bf16.msra.mxu0 (!%p237_p10), %v3478_v4  ;;  %v3491_v6 = vld [vmem:[%s4766_s1 + $0x14] ss:$8 sps:$4 sm:$0xff] (!%p237_p10)   ;;  %v3500_v8 = vld [vmem:[%s4766_s1 + $0x10] ss:$8 sps:$4 sm:$0xff] (!%p237_p10)   ;;  %v2964_v9 = vld [vmem:[%s4766_s1 + $0xa4] ss:$8 sps:$4 sm:$0xff] (!%p237_p10)  }
  0x17   : > { %595 = vmatprep.subr.bf16.mxu1 (!%p237_p10), %v2958_v5  ;;  %868 = vmatprep.subr.bf16.mxu0 (!%p237_p10), %v3491_v6  ;;  %v3510_v10 = vld [vmem:[%s4766_s1 + $0x24] ss:$8 sps:$4 sm:$0xff] (!%p237_p10)   ;;  %v2968_v11 = vld [vmem:[%s4766_s1 + $0xa0] ss:$8 sps:$4 sm:$0xff] (!%p237_p10)   ;;  %v2970_v13 = vld [vmem:[%s4766_s1 + $0xb4] ss:$8 sps:$4 sm:$0xff] (!%p237_p10)  }
  0x18   : > { %v3518_v12 = vld [vmem:[%s4766_s1 + $0x20] ss:$8 sps:$4 sm:$0xff] (!%p237_p10)   ;;  %v3528_v14 = vld [vmem:[%s4766_s1 + $0x34] ss:$8 sps:$4 sm:$0xff] (!%p237_p10)   ;;  %v2974_v15 = vld [vmem:[%s4766_s1 + $0xb0] ss:$8 sps:$4 sm:$0xff] (!%p237_p10)  }
  0x19   : > { %v3537_v16 = vld [vmem:[%s4766_s1 + $0x30] ss:$8 sps:$4 sm:$0xff] (!%p237_p10)   ;;  %v2976_v17 = vld [vmem:[%s4766_s1 + $0xc4] ss:$8 sps:$4 sm:$0xff] (!%p237_p10)   ;;  %v2980_v19 = vld [vmem:[%s4766_s1 + $0xc0] ss:$8 sps:$4 sm:$0xff] (!%p237_p10)  }
  0x1a   : > { %s3481_s10 = scalar_select %p270_p12, %s3333_s27, 1  ;;  %596 = vmatpush1.bf16.msra.mxu1 %v2962_v7  ;;  %869 = vmatpush1.bf16.msra.mxu0 %v3500_v8  ;;  %v3546_v18 = vld [vmem:[%s4766_s1 + $0x44] ss:$8 sps:$4 sm:$0xff]   ;;  %v3554_v20 = vld [vmem:[%s4766_s1 + $0x40] ss:$8 sps:$4 sm:$0xff]   ;;  %vm2341_vm2 = vcmask 1040384  }
  0x1b   : > { %s273_s20 = scalar_select %p272_p13, %s3329_s26, 3  ;;  %597 = vmatprep.subr.bf16.mxu1 %v2964_v9  ;;  %870 = vmatprep.subr.bf16.mxu0 %v3510_v10  ;;  %v2982_v21 = vld [vmem:[%s4766_s1 + $0xd4] ss:$8 sps:$4 sm:$0xff]   ;;  %v2986_v23 = vld [vmem:[%s4766_s1 + $0xd0] ss:$8 sps:$4 sm:$0xff]  }
  0x1c   : > { %s2877_s13 = smul.u32 132, %s3481_s10  ;;  %v3564_v22 = vld [vmem:[%s4766_s1 + $0x54] ss:$8 sps:$4 sm:$0xff]   ;;  %v3578_v24 = vld [vmem:[%s4766_s1 + $0x50] ss:$8 sps:$4 sm:$0xff]   ;;  %s2275_s7 = sld [smem:[#allocation2]] }
  0x1d   : > { %s2876_s10 = smul.u32 33, %s273_s20  ;;  %v2988_v25 = vld [vmem:[%s4766_s1 + $0xe4] ss:$8 sps:$4 sm:$0xff]   ;;  %v2992_v29 = vld [vmem:[%s4766_s1 + $0xe0] ss:$8 sps:$4 sm:$0xff]   ;;  %s2728_s15 = sshll.u32 %s3333_s27, 7 }
  0x1e   : > { %598 = vmatpush1.bf16.msra.mxu1 %v2968_v11  ;;  %871 = vmatpush1.bf16.msra.mxu0 %v3518_v12  ;;  %v3587_v26 = vld [vmem:[%s4766_s1 + $0x64] ss:$8 sps:$4 sm:$0xff]   ;;  %v3599_v33 = vld [vmem:[%s4766_s1 + $0x60] ss:$8 sps:$4 sm:$0xff]   ;;  %v2994_v34 = vld [vmem:[%s4766_s1 + $0xf4] ss:$8 sps:$4 sm:$0xff]  }
  0x1f   : > { %s276_s22 = sadd.s32 %s2877_s13, %s2876_s10  ;;  %599 = vmatprep.subr.bf16.mxu1 %v2970_v13  ;;  %872 = vmatprep.subr.bf16.mxu0 %v3528_v14  ;;  %v3613_v41 = vld [vmem:[%s4766_s1 + $0x74] ss:$8 sps:$4 sm:$0xff]   ;;  %v2998_v48 = vld [vmem:[%s4766_s1 + $0xf0] ss:$8 sps:$4 sm:$0xff]   ;;  %vm364_vm1 = vsmask.f32 7424 }
  0x20   : > { %s2611_s19 = sshll.u32 %s276_s22, 3  ;;  %v3628_v50 = vld [vmem:[%s4766_s1 + $0x70] ss:$8 sps:$4 sm:$0xff]   ;;  %v3002_v57 = vld [vmem:[%s4766_s1 + $0x104] ss:$8 sps:$4 sm:$0xff]   ;;  %s267_s13 = sand.u32 1, %s3321_s24  }
  0x21   : > { %s3569_s14 = scalar_lea.vmem %s4765_s0, %s2611_s19  ;;  %v3000_v63 = vld [vmem:[%s4766_s1 + $0x100] ss:$8 sps:$4 sm:$0xff]   ;;  %v3005_v11 = vld [vmem:[%s4766_s1 + $0x114] ss:$8 sps:$4 sm:$0xff]   ;;  %s4350_s10 = sshll.u32 %s267_s13, 8 }
  0x22   : > { %600 = vmatpush1.bf16.msra.mxu1 %v2974_v15  ;;  %873 = vmatpush1.bf16.msra.mxu0 %v3537_v16  ;;  %v281_v27 = vld [vmem:[%s3569_s14] sm:$0xff]  ;;  %v282_v28 = vld [vmem:[%s3569_s14 + $0x8] sm:$0xff]  ;;  %v283_v30 = vld [vmem:[%s3569_s14 + $0x10] sm:$0xff]  ;;  %s4373_s19 = scalar_lea.vmem [#allocation3], %s4350_s10  ;;  %s2727_s22 = sshll.u32 %s3329_s26, 5 }
  0x23   : > { %601 = vmatprep.subr.bf16.mxu1 %v2976_v17  ;;  %874 = vmatprep.subr.bf16.mxu0 %v3546_v18  ;;  %v284_v31 = vld [vmem:[%s3569_s14 + $0x18] sm:$0xff]  ;;  %v314_v32 = vpack.c.bf16 %v282_v28, %v281_v27  ;;  %v285_v38 = vld [vmem:[%s3569_s14 + $0x20] sm:$0xff]  ;;  %v286_v39 = vld [vmem:[%s3569_s14 + $0x28] sm:$0xff]  ;;  %s2517_s17 = sadd.s32 %s2728_s15, %s2727_s22  ;;  %s2520_s27 = sshll.u32 %s4373_s19, 4  ;;  %s4706_s27 = int_to_ptr.vmem [resolvable:$true] %s2520_s27 }
  0x24   : > { %v3604_v35 = vpack.c.bf16 %v284_v31, %v283_v30  ;;  %v287_v43 = vld [vmem:[%s3569_s14 + $0x30] sm:$0xff]  ;;  %v3617_v45 = vpack.c.bf16 %v286_v39, %v285_v38  ;;  %v288_v46 = vld [vmem:[%s3569_s14 + $0x38] sm:$0xff]  ;;  %v289_v53 = vld [vmem:[%s3569_s14 + $0x40] sm:$0xff]  ;;  %s2729_s26 = sshll.u32 %s2517_s17, 7  ;;  %s4713_s21 = scalar_lea.sflag [#allocation4], %s267_s13 }
  0x25   : > { %v366_v36 = vshrl.u32 %v314_v32, 16  ;;  %v368_v37 = vshll.u32 %v314_v32, 16  ;;  %v1094_v40 = vrot.slane %v314_v32, 1  ;;  %v3630_v52 = vpack.c.bf16 %v288_v46, %v287_v43  ;;  %v290_v54 = vld [vmem:[%s3569_s14 + $0x48] sm:$0xff]  ;;  %v291_v3 = vld [vmem:[%s3569_s14 + $0x50] sm:$0xff]  ;;  %v292_v9 = vld [vmem:[%s3569_s14 + $0x58] sm:$0xff]  ;;  %s4704_s20 = scalar_lea.hbm %s4771_s6, %s2729_s26 }
  0x26   : > { %602 = vmatpush1.bf16.msra.mxu1 %v2980_v19  ;;  %875 = vmatpush1.bf16.msra.mxu0 %v3554_v20  ;;  %v373_v42 = vshll.u32 %v3604_v35, 16  ;;  %v1095_v47 = vrot.slane %v3604_v35, 1  ;;  %v1097_v56 = vrot.slane %v3617_v45, 1  ;;  %v3642_v58 = vpack.c.bf16 %v290_v54, %v289_v53  ;;  %v3003_v19 = vld [vmem:[%s4766_s1 + $0x110] ss:$8 sps:$4 sm:$0xff]   ;;  %v293_v30 = vld [vmem:[%s3569_s14 + $0x60] sm:$0xff] }
  0x27   : > { %603 = vmatprep.subr.bf16.mxu1 %v2982_v21  ;;  %876 = vmatprep.subr.bf16.mxu0 %v3564_v22  ;;  %v370_v44 = vrot.slane %v368_v37, 1  ;;  %v1099_v60 = vrot.slane %v3630_v52, 1  ;;  %v377_v61 = vshrl.u32 %v3604_v35, 16  ;;  %v381_v0 = vshll.u32 %v3617_v45, 16  ;;  %v3008_v21 = vld [vmem:[%s4766_s1 + $0x124] ss:$8 sps:$4 sm:$0xff]  }
  0x28   : > { %v375_v49 = vrot.slane %v373_v42, 1  ;;  %v3635_v55 = vsel %vm1093_vm0, %v1094_v40, %v1095_v47  ;;  %v3645_v59 = vsel %vm1093_vm0, %v1095_v47, %v1097_v56  ;;  %v1101_v7 = vrot.slane %v3642_v58, 1  ;;  %v294_v31 = vld [vmem:[%s3569_s14 + $0x68] sm:$0xff]  ;;  %v296_v37 = vld [vmem:[%s3569_s14 + $0x78] sm:$0xff]  ;;  %s3251_s5 = scalar_lea.vmem %s4706_s27, 4096 }
  0x29   : > { %v371_v51 = vor.u32 %v370_v44, %v366_v36  ;;  %v3657_v5 = vsel %vm1093_vm0, %v1097_v56, %v1099_v60  ;;  %v383_v17 = vrot.slane %v381_v0, 1  ;;  %v389_v27 = vshll.u32 %v3630_v52, 16  ;;  %v295_v36 = vld [vmem:[%s3569_s14 + $0x70] sm:$0xff]  ;;  %v3012_v43 = vld [vmem:[%s4766_s1 + $0x140] ss:$8 sps:$4 sm:$0xff]   ;;  %p3252_p0 = scmp.ne.s32.totalorder %s4706_s27, %s3251_s5 }
  0x2a   : > { %604 = vmatpush1.bf16.msra.mxu1 %v2986_v23  ;;  %877 = vmatpush1.bf16.msra.mxu0 %v3578_v24  ;;  %v3666_v13 = vsel %vm1093_vm0, %v1099_v60, %v1101_v7  ;;  %v379_v15 = vor.u32 %v377_v61, %v375_v49  ;;  %v393_v40 = vshrl.u32 %v3630_v52, 16  ;;  %v397_v42 = vshll.u32 %v3642_v58, 16  ;;  %v3018_v54 = vld [vmem:[%s4766_s1 + $0x160] ss:$8 sps:$4 sm:$0xff]  }
  0x2b   : > { %605 = vmatprep.subr.bf16.mxu1 %v2988_v25  ;;  %878 = vmatprep.subr.bf16.mxu0 %v3587_v26  ;;  %v376_v62 = vsel %vm364_vm1, %v371_v51, %v375_v49  ;;  %v385_v25 = vshrl.u32 %v3617_v45, 16  ;;  %v401_v51 = vshrl.u32 %v3642_v58, 16  ;;  %p3253_p1 = pnand %p3252_p0, %p3440_p3 }
  0x2c   : > { %v384_v23 = vsel %vm364_vm1, %v379_v15, %v383_v17  ;;  %v399_v47 = vrot.slane %v397_v42, 1  ;;  %v299_v15 = vld [vmem:[%s3569_s14 + $0x90] sm:$0xff] }
  0x2d   : > { %p3254_p2 = pneg %p3253_p1 }
  0x2e   : > { %606 = vmatpush1.bf16.msra.mxu1 %v2992_v29  ;;  %879 = vmatpush1.bf16.msra.mxu0 %v3599_v33  ;;  %v3006_v29 = vld [vmem:[%s4766_s1 + $0x120] ss:$8 sps:$4 sm:$0xff]  }
  0x2f   : > { %607 = vmatprep.subr.bf16.mxu1 %v2994_v34  ;;  %880 = vmatprep.subr.bf16.mxu0 %v3613_v41  ;;  %v3704_v34 = vpack.c.bf16 %v294_v31, %v293_v30 }
  0x31   : > { %v1105_v38 = vrot.slane %v3704_v34, 1  ;;  %v417_v61 = vshrl.u32 %v3704_v34, 16 }
  0x32   : > { %608 = vmatpush1.bf16.msra.mxu1 %v2998_v48  ;;  %881 = vmatpush1.bf16.msra.mxu0 %v3628_v50 }
  0x33   : > { %1223 = vmatprep.subr.bf16.mxu0 %v3002_v57  ;;  %2732 = vmatprep.subr.bf16.mxu1 %v3467_v1  ;;  %v3672_v1 = vpack.c.bf16 %v292_v9, %v291_v3  ;;  %v413_v57 = vshll.u32 %v3704_v34, 16 }
  0x35   : > { %626 = vmatmul.mubr.bf16.vlgmr.msra.gmra.mrb[0].mxu1 %v376_v62  ;;  %899 = vmatmul.mubr.bf16.vlgmr.msra.gmra.mrb[0].mxu0 %v314_v32  ;;  %v391_v32 = vrot.slane %v389_v27, 1  ;;  %v405_v53 = vshll.u32 %v3672_v1, 16  ;;  %v415_v60 = vrot.slane %v413_v57, 1  ;;  %v308_v57 = vld [vmem:[%s3569_s14 + $0xd8] sm:$0xff] }
  0x36   : > { %1224 = vmatpush1.bf16.msra.mxu0 %v3000_v63  ;;  %2740 = vmatpush1.bf16.msra.mxu1 %v3478_v4  ;;  %v1103_v4 = vrot.slane %v3672_v1, 1  ;;  %v297_v63 = vld [vmem:[%s3569_s14 + $0x80] sm:$0xff] }
  0x37   : > { %635 = vmatprep.mubr.bf16.mxu1 %v3347_v2  ;;  %908 = vmatprep.mubr.bf16.mxu0 %v3347_v2  ;;  %v407_v56 = vrot.slane %v405_v53, 1  ;;  %v305_v53 = vld [vmem:[%s3569_s14 + $0xc0] sm:$0xff] }
  0x38   : > { %1225 = vmatprep.subr.bf16.mxu0 %v3005_v11  ;;  %2733 = vmatprep.subr.bf16.mxu1 %v3491_v6  ;;  %v3686_v28 = vsel %vm1093_vm0, %v1101_v7, %v1103_v4  ;;  %v3011_v6 = vld [vmem:[%s4766_s1 + $0x134] ss:$8 sps:$4 sm:$0xff]   ;;  %v3723_v44 = vsel %vm1093_vm0, %v1103_v4, %v1105_v38 }
  0x3a   : > { %1226 = vmatpush1.bf16.msra.mxu0 %v3003_v19  ;;  %2741 = vmatpush1.bf16.msra.mxu1 %v3500_v8  ;;  %v387_v8 = vor.u32 %v385_v25, %v383_v17  ;;  %v300_v17 = vld [vmem:[%s3569_s14 + $0x98] sm:$0xff]  ;;  %v311_v19 = vld [vmem:[%s3569_s14 + $0xf0] sm:$0xff] }
  0x3b   : > { %1227 = vmatprep.subr.bf16.mxu0 %v3008_v21  ;;  %2734 = vmatprep.subr.bf16.mxu1 %v3510_v10  ;;  %v3009_v10 = vld [vmem:[%s4766_s1 + $0x130] ss:$8 sps:$4 sm:$0xff]   ;;  %v313_v21 = vld [vmem:[%s3569_s14 + $0x100] sm:$0x3]  ;;  %v3793_v25 = vpack.c.bf16 %v300_v17, %v299_v15 }
  0x3c   : > { %v392_v39 = vsel %vm364_vm1, %v387_v8, %v391_v32 }
  0x3d   : > { %636 = vmatmul.mubr.bf16.gmra.mrb[4].mxu1 %v384_v23  ;;  %909 = vmatmul.mubr.bf16.gmra.mrb[4].mxu0 %v3604_v35  ;;  %v3014_v35 = vld [vmem:[%s4766_s1 + $0x144] ss:$8 sps:$4 sm:$0xff]   ;;  %v437_v31 = vshll.u32 %v3793_v25, 16 }
  0x3e   : > { %645 = vmatprep.mubr.bf16.mxu1 %v3347_v2  ;;  %918 = vmatprep.mubr.bf16.mxu0 %v3347_v2 }
  0x3f   : > { %1228 = vmatpush1.bf16.msra.mxu0 %v3006_v29  ;;  %2742 = vmatpush1.bf16.msra.mxu1 %v3518_v12  ;;  %v3716_v12 = vpack.c.bf16 %v296_v37, %v295_v36  ;;  %v3797_v29 = vpack.c.bf16 %v313_v21, %v313_v21 }
  0x40   : > { %1229 = vmatprep.subr.bf16.mxu0 %v3011_v6  ;;  %2735 = vmatprep.subr.bf16.mxu1 %v3528_v14  ;;  %v3017_v14 = vld [vmem:[%s4766_s1 + $0x154] ss:$8 sps:$4 sm:$0xff]  }
  0x41   : > { %v1107_v46 = vrot.slane %v3716_v12, 1  ;;  %v421_v62 = vshll.u32 %v3716_v12, 16  ;;  %v425_v9 = vshrl.u32 %v3716_v12, 16 }
  0x43   : > { %1230 = vmatpush1.bf16.msra.mxu0 %v3009_v10  ;;  %2743 = vmatpush1.bf16.msra.mxu1 %v3537_v16  ;;  %v395_v16 = vor.u32 %v393_v40, %v391_v32  ;;  %v3736_v48 = vsel %vm1093_vm0, %v1105_v38, %v1107_v46  ;;  %v423_v0 = vrot.slane %v421_v62, 1  ;;  %v1125_v32 = vrot.slane %v3797_v29, 1  ;;  %v301_v10 = vld [vmem:[%s3569_s14 + $0xa0] sm:$0xff] }
  0x44   : > { %1231 = vmatprep.subr.bf16.mxu0 %v3014_v35  ;;  %2736 = vmatprep.subr.bf16.mxu1 %v3546_v18  ;;  %v3015_v18 = vld [vmem:[%s4766_s1 + $0x150] ss:$8 sps:$4 sm:$0xff]   ;;  %v439_v35 = vrot.slane %v437_v31, 1  ;;  %v441_v40 = vshrl.u32 %v3793_v25, 16 }
  0x45   : > { %646 = vmatmul.mubr.bf16.gmra.mrb[8].mxu1 %v392_v39  ;;  %919 = vmatmul.mubr.bf16.gmra.mrb[8].mxu0 %v3617_v45  ;;  %v3020_v45 = vld [vmem:[%s4766_s1 + $0x164] ss:$8 sps:$4 sm:$0xff]   ;;  %v400_v49 = vsel %vm364_vm1, %v395_v16, %v399_v47  ;;  %v427_v4 = vor.u32 %v425_v9, %v423_v0 }
  0x46   : > { %655 = vmatprep.mubr.bf16.mxu1 %v3347_v2  ;;  %928 = vmatprep.mubr.bf16.mxu0 %v3347_v2  ;;  %v443_v16 = vor.u32 %v441_v40, %v439_v35 }
  0x47   : > { %1232 = vmatpush1.bf16.msra.mxu0 %v3012_v43  ;;  %2744 = vmatpush1.bf16.msra.mxu1 %v3554_v20  ;;  %v3023_v20 = vld [vmem:[%s4766_s1 + $0x174] ss:$8 sps:$4 sm:$0xff]  }
  0x48   : > { %1233 = vmatprep.subr.bf16.mxu0 %v3017_v14  ;;  %2737 = vmatprep.subr.bf16.mxu1 %v3564_v22  ;;  %v403_v22 = vor.u32 %v401_v51, %v399_v47  ;;  %v303_v43 = vld [vmem:[%s3569_s14 + $0xb0] sm:$0xff]  ;;  %v304_v14 = vld [vmem:[%s3569_s14 + $0xb8] sm:$0xff] }
  0x4b   : > { %1234 = vmatpush1.bf16.msra.mxu0 %v3015_v18  ;;  %2745 = vmatpush1.bf16.msra.mxu1 %v3578_v24  ;;  %v3021_v24 = vld [vmem:[%s4766_s1 + $0x170] ss:$8 sps:$4 sm:$0xff]   ;;  %v3824_v18 = vpack.c.bf16 %v304_v14, %v303_v43 }
  0x4c   : > { %1235 = vmatprep.subr.bf16.mxu0 %v3020_v45  ;;  %2738 = vmatprep.subr.bf16.mxu1 %v3587_v26  ;;  %v408_v26 = vsel %vm364_vm1, %v403_v22, %v407_v56 }
  0x4d   : > { %656 = vmatmul.mubr.bf16.gmra.mrb[12].mxu1 %v400_v49  ;;  %929 = vmatmul.mubr.bf16.gmra.mrb[12].mxu0 %v3630_v52  ;;  %v409_v52 = vshrl.u32 %v3672_v1, 16  ;;  %v453_v51 = vshll.u32 %v3824_v18, 16 }
  0x4e   : > { %665 = vmatprep.mubr.bf16.mxu1 %v3347_v2  ;;  %938 = vmatprep.mubr.bf16.mxu0 %v3347_v2 }
  0x4f   : > { %1236 = vmatpush1.bf16.msra.mxu0 %v3018_v54  ;;  %2746 = vmatpush1.bf16.msra.mxu1 %v3599_v33  ;;  %v411_v33 = vor.u32 %v409_v52, %v407_v56  ;;  %v306_v54 = vld [vmem:[%s3569_s14 + $0xc8] sm:$0xff]  ;;  %v307_v52 = vld [vmem:[%s3569_s14 + $0xd0] sm:$0xff] }
  0x50   : > { %1237 = vmatprep.subr.bf16.mxu0 %v3023_v20  ;;  %2739 = vmatprep.subr.bf16.mxu1 %v3613_v41  ;;  %v455_v20 = vrot.slane %v453_v51, 1  ;;  %v3834_v22 = vpack.c.bf16 %v306_v54, %v305_v53 }
  0x51   : > { %v416_v41 = vsel %vm364_vm1, %v411_v33, %v415_v60 }
  0x53   : > { %1238 = vmatpush1.bf16.msra.mxu0 %v3021_v24  ;;  %2747 = vmatpush1.bf16.msra.mxu1 %v3628_v50  ;;  %v298_v50 = vld [vmem:[%s3569_s14 + $0x88] sm:$0xff]  ;;  %v457_v24 = vshrl.u32 %v3824_v18, 16 }
  0x54   : > { %v3780_v3 = vpack.c.bf16 %v298_v50, %v297_v63  ;;  %v309_v63 = vld [vmem:[%s3569_s14 + $0xe0] sm:$0xff]  ;;  %v310_v50 = vld [vmem:[%s3569_s14 + $0xe8] sm:$0xff] }
  0x55   : > { %666 = vmatmul.mubr.bf16.gmra.mrb[16].mxu1 %v408_v26  ;;  %939 = vmatmul.mubr.bf16.gmra.mrb[16].mxu0 %v3642_v58  ;;  %v419_v58 = vor.u32 %v417_v61, %v415_v60  ;;  %v461_v26 = vshll.u32 %v3834_v22, 16  ;;  %v3844_v60 = vpack.c.bf16 %v308_v57, %v307_v52  ;;  %v465_v61 = vshrl.u32 %v3834_v22, 16 }
  0x56   : > { %675 = vmatprep.mubr.bf16.mxu1 %v3347_v2  ;;  %948 = vmatprep.mubr.bf16.mxu0 %v3347_v2  ;;  %v429_v11 = vshll.u32 %v3780_v3, 16  ;;  %v433_v6 = vshrl.u32 %v3780_v3, 16  ;;  %v1109_v31 = vrot.slane %v3780_v3, 1 }
  0x57   : > { %v424_v7 = vsel %vm364_vm1, %v419_v58, %v423_v0  ;;  %v463_v33 = vrot.slane %v461_v26, 1  ;;  %v469_v62 = vshll.u32 %v3844_v60, 16  ;;  %v3854_v0 = vpack.c.bf16 %v310_v50, %v309_v63 }
  0x58   : > { %v431_v23 = vrot.slane %v429_v11, 1  ;;  %v473_v9 = vshrl.u32 %v3844_v60, 16  ;;  %v1482_v63 = vlaneseq }
  0x59   : > { %v471_v58 = vrot.slane %v469_v62, 1  ;;  %v477_v11 = vshll.u32 %v3854_v0, 16 }
  0x5a   : > { %v432_v30 = vsel %vm364_vm1, %v427_v4, %v431_v23  ;;  %v435_v37 = vor.u32 %v433_v6, %v431_v23  ;;  %v493_v6 = vshll.u32 %v3797_v29, 16 }
  0x5b   : > { %v479_v15 = vrot.slane %v477_v11, 1  ;;  %v1480_v11 = vld [vmem:[%s4767_s2] sm:$0x3] }
  0x5c   : > { %v440_v39 = vsel %vm364_vm1, %v435_v37, %v439_v35  ;;  %v1117_v37 = vrot.slane %v3834_v22, 1  ;;  %v1119_v35 = vrot.slane %v3844_v60, 1 }
  0x5d   : > { %676 = vmatmul.mubr.bf16.gmra.mrb[20].mxu1 %v416_v41  ;;  %949 = vmatmul.mubr.bf16.gmra.mrb[20].mxu0 %v3672_v1  ;;  %v312_v1 = vld [vmem:[%s3569_s14 + $0xf8] sm:$0xff] }
  0x5e   : > { %685 = vmatprep.mubr.bf16.mxu1 %v3347_v2  ;;  %958 = vmatprep.mubr.bf16.mxu0 %v3347_v2  ;;  %v3795_v27 = vpack.c.bf16 %v312_v1, %v311_v19  ;;  %v481_v19 = vshrl.u32 %v3854_v0, 16 }
  0x60   : > { %v1123_v8 = vrot.slane %v3795_v27, 1  ;;  %v485_v1 = vshll.u32 %v3795_v27, 16  ;;  %v489_v23 = vshrl.u32 %v3795_v27, 16 }
  0x62   : > { %v3809_v36 = vsel %vm1093_vm0, %v1123_v8, %v1125_v32  ;;  %v487_v21 = vrot.slane %v485_v1, 1 }
  0x65   : > { %686 = vmatmul.mubr.bf16.gmra.mrb[24].mxu1 %v424_v7  ;;  %959 = vmatmul.mubr.bf16.gmra.mrb[24].mxu0 %v3704_v34  ;;  %v302_v34 = vld [vmem:[%s3569_s14 + $0xa8] sm:$0xff] }
  0x66   : > { %695 = vmatprep.mubr.bf16.mxu1 %v3347_v2  ;;  %968 = vmatprep.mubr.bf16.mxu0 %v3347_v2  ;;  %v3814_v38 = vpack.c.bf16 %v302_v34, %v301_v10  ;;  %v1110_v10 = vsel %vm1093_vm0, %v1107_v46, %v1109_v31  ;;  %v1115_v34 = vrot.slane %v3824_v18, 1 }
  0x68   : > { %v445_v42 = vshll.u32 %v3814_v38, 16  ;;  %v449_v49 = vshrl.u32 %v3814_v38, 16 }
  0x6a   : > { %v447_v47 = vrot.slane %v445_v42, 1 }
  0x6c   : > { %v448_v45 = vsel %vm364_vm1, %v443_v16, %v447_v47 }
  0x6d   : > { %696 = vmatmul.mubr.bf16.gmra.mrb[28].mxu1 %v432_v30  ;;  %969 = vmatmul.mubr.bf16.gmra.mrb[28].mxu0 %v3716_v12  ;;  %v495_v30 = vrot.slane %v493_v6, 1  ;;  %v1113_v12 = vrot.slane %v3814_v38, 1 }
  0x6e   : > { %705 = vmatprep.mubr.bf16.mxu1 %v3347_v2  ;;  %1255 = vmatprep.mubr.bf16.mxu0 %v3347_v2 }
  0x75   : > { %706 = vmatmul.mubr.bf16.gmra.mrb[32].mxu1 %v440_v39  ;;  %1256 = vmatmul.mubr.bf16.vlgmr.msra.gmra.mrb[0].mxu0 %v3635_v55  ;;  %v451_v55 = vor.u32 %v449_v49, %v447_v47  ;;  %v1121_v39 = vrot.slane %v3854_v0, 1 }
  0x76   : > { %715 = vmatprep.mubr.bf16.mxu1 %v3347_v2  ;;  %1265 = vmatprep.mubr.bf16.mxu0 %v3347_v2 }
  0x77   : > { %v456_v56 = vsel %vm364_vm1, %v451_v55, %v455_v20  ;;  %v1122_v40 = vsel %vm1093_vm0, %v1119_v35, %v1121_v39  ;;  %v1124_v42 = vsel %vm1093_vm0, %v1121_v39, %v1123_v8 }
  0x7d   : > { %716 = vmatmul.mubr.bf16.gmra.mrb[36].mxu1 %v448_v45  ;;  %1266 = vmatmul.mubr.bf16.gmra.mrb[4].mxu0 %v3645_v59  ;;  %v459_v59 = vor.u32 %v457_v24, %v455_v20 }
  0x7e   : > { %725 = vmatprep.mubr.bf16.mxu1 %v3347_v2  ;;  %1275 = vmatprep.mubr.bf16.mxu0 %v3347_v2 }
  0x7f   : > { %v464_v41 = vsel %vm364_vm1, %v459_v59, %v463_v33 }
  0x85   : > { %726 = vmatmul.mubr.bf16.gmra.mrb[40].mxu1 %v456_v56  ;;  %1276 = vmatmul.mubr.bf16.gmra.mrb[8].mxu0 %v3657_v5  ;;  %v467_v5 = vor.u32 %v465_v61, %v463_v33 }
  0x86   : > { %735 = vmatprep.mubr.bf16.mxu1 %v3347_v2  ;;  %1285 = vmatprep.mubr.bf16.mxu0 %v3347_v2 }
  0x87   : > { %v472_v7 = vsel %vm364_vm1, %v467_v5, %v471_v58  ;;  %v1483_v5 = vshrl.u32 %v1482_v63, 7 }
  0x8d   : > { %736 = vmatmul.mubr.bf16.gmra.mrb[44].mxu1 %v464_v41  ;;  %1286 = vmatmul.mubr.bf16.gmra.mrb[12].mxu0 %v3666_v13  ;;  %v475_v13 = vor.u32 %v473_v9, %v471_v58  ;;  %v1488_v9 = vsub.s32 1, %v1483_v5 }
  0x8e   : > { %745 = vmatprep.mubr.bf16.mxu1 %v3347_v2  ;;  %1295 = vmatprep.mubr.bf16.mxu0 %v3347_v2 }
  0x8f   : > { %v480_v17 = vsel %vm364_vm1, %v475_v13, %v479_v15 }
  0x95   : > { %746 = vmatmul.mubr.bf16.gmra.mrb[48].mxu1 %v472_v7  ;;  %1296 = vmatmul.mubr.bf16.gmra.mrb[16].mxu0 %v3686_v28  ;;  %v483_v28 = vor.u32 %v481_v19, %v479_v15  ;;  %v3964_v15 = vrot.slane %v1480_v11, %v1488_v9 }
  0x96   : > { %755 = vmatprep.mubr.bf16.mxu1 %v3347_v2  ;;  %1305 = vmatprep.mubr.bf16.mxu0 %v3347_v2 }
  0x97   : > { %v488_v4 = vsel %vm364_vm1, %v483_v28, %v487_v21 }
  0x9d   : > { %756 = vmatmul.mubr.bf16.gmra.mrb[52].mxu1 %v480_v17  ;;  %1306 = vmatmul.mubr.bf16.gmra.mrb[20].mxu0 %v3723_v44  ;;  %v491_v44 = vor.u32 %v489_v23, %v487_v21 }
  0x9e   : > { %765 = vmatprep.mubr.bf16.mxu1 %v3347_v2  ;;  %1315 = vmatprep.mubr.bf16.mxu0 %v3347_v2 }
  0x9f   : > { %v496_v32 = vsel %vm364_vm1, %v491_v44, %v495_v30 }
  0xa5   : > { %766 = vmatmul.mubr.bf16.gmra.mrb[56].mxu1 %v488_v4  ;;  %1316 = vmatmul.mubr.bf16.gmra.mrb[24].mxu0 %v3736_v48  ;;  %v1111_v48 = vrot.slane %v3793_v25, 1 }
  0xa6   : > { %775 = vmatprep.mubr.bf16.mxu1 %v3347_v2  ;;  %1325 = vmatprep.mubr.bf16.mxu0 %v3347_v2 }
  0xa7   : > { %v1112_v29 = vsel %vm1093_vm0, %v1109_v31, %v1111_v48  ;;  %v1114_v46 = vsel %vm1093_vm0, %v1111_v48, %v1113_v12 }
  0xad   : > { %776 = vmatmul.mubr.bf16.gmra.mrb[60].mxu1 %v496_v32  ;;  %1326 = vmatmul.mubr.bf16.gmra.mrb[28].mxu0 %v1110_v10 }
  0xae   : > { %978 = vmatprep.mubr.bf16.mxu1 %v3347_v2  ;;  %1335 = vmatprep.mubr.bf16.mxu0 %v3347_v2 }
  0xb5   : > { %979 = vmatmul.mubr.bf16.vlgmr.msra.gmra.mrb[32].mxu1 %v3780_v3  ;;  %1336 = vmatmul.mubr.bf16.gmra.mrb[32].mxu0 %v1112_v29  ;;  %v1116_v3 = vsel %vm1093_vm0, %v1113_v12, %v1115_v34 }
  0xb6   : > { %988 = vmatprep.mubr.bf16.mxu1 %v3347_v2  ;;  %1345 = vmatprep.mubr.bf16.mxu0 %v3347_v2 }
  0xbd   : > { %989 = vmatmul.mubr.bf16.gmra.mrb[36].mxu1 %v3793_v25  ;;  %1346 = vmatmul.mubr.bf16.gmra.mrb[36].mxu0 %v1114_v46  ;;  %v1118_v25 = vsel %vm1093_vm0, %v1115_v34, %v1117_v37 }
  0xbe   : > { %998 = vmatprep.mubr.bf16.mxu1 %v3347_v2  ;;  %1355 = vmatprep.mubr.bf16.mxu0 %v3347_v2 }
  0xc5   : > { %999 = vmatmul.mubr.bf16.gmra.mrb[40].mxu1 %v3814_v38  ;;  %1356 = vmatmul.mubr.bf16.gmra.mrb[40].mxu0 %v1116_v3  ;;  %v1120_v38 = vsel %vm1093_vm0, %v1117_v37, %v1119_v35 }
  0xc6   : > { %1008 = vmatprep.mubr.bf16.mxu1 %v3347_v2  ;;  %1365 = vmatprep.mubr.bf16.mxu0 %v3347_v2 }
  0xcd   : > { %1009 = vmatmul.mubr.bf16.gmra.mrb[44].mxu1 %v3824_v18  ;;  %1366 = vmatmul.mubr.bf16.gmra.mrb[44].mxu0 %v1118_v25 }
  0xce   : > { %1018 = vmatprep.mubr.bf16.mxu1 %v3347_v2  ;;  %1375 = vmatprep.mubr.bf16.mxu0 %v3347_v2 }
  0xd5   : > { %1019 = vmatmul.mubr.bf16.gmra.mrb[48].mxu1 %v3834_v22  ;;  %1376 = vmatmul.mubr.bf16.gmra.mrb[48].mxu0 %v1120_v38 }
  0xd6   : > { %1028 = vmatprep.mubr.bf16.mxu1 %v3347_v2  ;;  %1385 = vmatprep.mubr.bf16.mxu0 %v3347_v2 }
  0xdd   : > { %1029 = vmatmul.mubr.bf16.gmra.mrb[52].mxu1 %v3844_v60  ;;  %1386 = vmatmul.mubr.bf16.gmra.mrb[52].mxu0 %v1122_v40 }
  0xde   : > { %1038 = vmatprep.mubr.bf16.mxu1 %v3347_v2  ;;  %1395 = vmatprep.mubr.bf16.mxu0 %v3347_v2 }
  0xe5   : > { %1039 = vmatmul.mubr.bf16.gmra.mrb[56].mxu1 %v3854_v0  ;;  %1396 = vmatmul.mubr.bf16.gmra.mrb[56].mxu0 %v1124_v42 }
  0xe6   : > { %1048 = vmatprep.mubr.bf16.mxu1 %v3347_v2  ;;  %1405 = vmatprep.mubr.bf16.mxu0 %v3347_v2 }
  0xed   : > { %1049 = vmatmul.mubr.bf16.gmra.mrb[60].mxu1 %v3795_v27  ;;  %1406 = vmatmul.mubr.bf16.gmra.mrb[60].mxu0 %v3809_v36 }
 0x108   : > { %v627_v43 = vpop.f32.mrb[0].mxu1 }
 0x109   : > { %v629_v14 = vpop.f32.mrb[1].mxu1 }
 0x10a   : > { %v631_v16 = vpop.f32.mrb[2].mxu1 }
 0x10b   : > { %v633_v47 = vpop.f32.mrb[3].mxu1 }
 0x110   : > { %v637_v18 = vpop.f32.mrb[4].mxu1 }
 0x111   : > { %v639_v45 = vpop.f32.mrb[5].mxu1 }
 0x112   : > { %v641_v49 = vpop.f32.mrb[6].mxu1 }
 0x113   : > { %v643_v51 = vpop.f32.mrb[7].mxu1 }
 0x118   : > { %v647_v8 = vpop.f32.mrb[8].mxu1 }
 0x119   : > { %v649_v53 = vpop.f32.mrb[9].mxu1 }
 0x11a   : > { %v651_v54 = vpop.f32.mrb[10].mxu1 }
 0x11b   : > { %v3919_v55 = vpop.f32.mrb[11].mxu1 }
 0x120   : > { %v3921_v20 = vpop.f32.mrb[12].mxu1 }
 0x121   : > { %v3923_v2 = vpop.f32.mrb[13].mxu1 }
 0x122   : > { %v3925_v27 = vpop.f32.mrb[14].mxu1 }
 0x123   : > { %v3927_v36 = vpop.f32.mrb[15].mxu1 }
 0x128   : > { %v3929_v22 = vpop.f32.mrb[16].mxu1 }
 0x129   : > { %v3931_v56 = vpop.f32.mrb[17].mxu1 }
 0x12a   : > { %v3933_v24 = vpop.f32.mrb[18].mxu1 }
 0x12b   : > { %v3935_v26 = vpop.f32.mrb[19].mxu1 }
 0x130   : > { %v3937_v52 = vpop.f32.mrb[20].mxu1 }
 0x131   : > { %v3939_v57 = vpop.f32.mrb[21].mxu1 }
 0x132   : > { %v3941_v59 = vpop.f32.mrb[22].mxu1 }
 0x133   : > { %v3943_v33 = vpop.f32.mrb[23].mxu1 }
 0x138   : > { %v3945_v60 = vpop.f32.mrb[24].mxu1 }
 0x139   : > { %v3947_v41 = vpop.f32.mrb[25].mxu1 }
 0x13a   : > { %v3949_v61 = vpop.f32.mrb[26].mxu1 }
 0x13b   : > { %v3951_v62 = vpop.f32.mrb[27].mxu1 }
 0x140   : > { %v3953_v50 = vpop.f32.mrb[28].mxu1 }
 0x141   : > { %v3955_v58 = vpop.f32.mrb[29].mxu1 }
 0x142   : > { %v3957_v0 = vpop.f32.mrb[30].mxu1 }
 0x143   : > { %v3959_v7 = vpop.f32.mrb[31].mxu1 }
 0x148   : > { %v1257_v13 = vpop.f32.mrb[0].mxu0 }
 0x149   : > { %v3966_v17 = vadd.f32 %v1257_v13, %v627_v43  ;;  %v1259_v19 = vpop.f32.mrb[1].mxu0  ;;  %v1484_v13 = vsub.s32 0, %v1483_v5 }
 0x14a   : > { %v2749_v1 = vadd.f32 %v1259_v19, %v629_v14  ;;  %v1261_v28 = vpop.f32.mrb[2].mxu0 }
 0x14b   : > { %v3968_v21 = vadd.f32 %v1261_v28, %v631_v16  ;;  %v1263_v4 = vpop.f32.mrb[3].mxu0 }
 0x14c   : > { %v1493_v23 = vadd.f32 %v2749_v1, %v3964_v15  ;;  %v2751_v6 = vadd.f32 %v1263_v4, %v633_v47 }
 0x14e   : > { %v2692_v44 = vmul.f32 -1.442695, %v1493_v23  ;;  %v1495_v30 = vadd.f32 %v2751_v6, %v3964_v15  ;;  %v3988_v23 = vrot.slane %v1480_v11, %v1484_v13 }
 0x150   : > { %3024 = vpow2.f32 %v2692_v44  ;;  %v2693_v31 = vmul.f32 -1.442695, %v1495_v30  ;;  %v1267_v32 = vpop.f32.mrb[4].mxu0  ;;  %v1492_v11 = vadd.f32 %v3966_v17, %v3988_v23 }
 0x151   : > { %v3972_v10 = vadd.f32 %v1267_v32, %v637_v18  ;;  %v1269_v48 = vpop.f32.mrb[5].mxu0 }
 0x152   : > { %3026 = vpow2.f32 %v2693_v31  ;;  %v2753_v29 = vadd.f32 %v1269_v48, %v639_v45  ;;  %v1271_v12 = vpop.f32.mrb[6].mxu0 }
 0x153   : > { %v3974_v46 = vadd.f32 %v1271_v12, %v641_v49  ;;  %v1273_v34 = vpop.f32.mrb[7].mxu0 }
 0x154   : > { %v1497_v3 = vadd.f32 %v2753_v29, %v3964_v15  ;;  %v2755_v37 = vadd.f32 %v1273_v34, %v643_v51 }
 0x156   : > { %v2694_v25 = vmul.f32 -1.442695, %v1497_v3  ;;  %v1499_v35 = vadd.f32 %v2755_v37, %v3964_v15 }
 0x158   : > { %3028 = vpow2.f32 %v2694_v25  ;;  %v2695_v38 = vmul.f32 -1.442695, %v1499_v35  ;;  %v1277_v39 = vpop.f32.mrb[8].mxu0 }
 0x159   : > { %v3978_v40 = vadd.f32 %v1277_v39, %v647_v8  ;;  %v1279_v42 = vpop.f32.mrb[9].mxu0 }
 0x15a   : > { %v3025_v43 = vpop.eup %3024  ;;  %3030 = vpow2.f32 %v2695_v38  ;;  %v2757_v14 = vadd.f32 %v1279_v42, %v649_v53  ;;  %v1281_v16 = vpop.f32.mrb[10].mxu0 }
 0x15b   : > { %v1652_v47 = vadd.f32 1.0, %v3025_v43  ;;  %v3980_v18 = vadd.f32 %v1281_v16, %v651_v54  ;;  %v1283_v45 = vpop.f32.mrb[11].mxu0 }
 0x15c   : > { %v3027_v49 = vpop.eup %3026  ;;  %v1501_v51 = vadd.f32 %v2757_v14, %v3964_v15  ;;  %v2759_v63 = vadd.f32 %v1283_v45, %v3919_v55 }
 0x15d   : > { %3032 = vrcp.f32 %v1652_v47  ;;  %v1653_v9 = vadd.f32 1.0, %v3027_v49  ;;  %v1496_v49 = vadd.f32 %v3972_v10, %v3988_v23 }
 0x15e   : > { %v2696_v19 = vmul.f32 -1.442695, %v1501_v51  ;;  %v1503_v8 = vadd.f32 %v2759_v63, %v3964_v15 }
 0x15f   : > { %3034 = vrcp.f32 %v1653_v9  ;;  %v1498_v9 = vadd.f32 %v3974_v46, %v3988_v23 }
 0x160   : > { %3036 = vpow2.f32 %v2696_v19  ;;  %v2697_v1 = vmul.f32 -1.442695, %v1503_v8  ;;  %v1287_v53 = vpop.f32.mrb[12].mxu0 }
 0x161   : > { %v3986_v28 = vadd.f32 %v1287_v53, %v3921_v20  ;;  %v1289_v54 = vpop.f32.mrb[13].mxu0 }
 0x162   : > { %v3029_v4 = vpop.eup %3028  ;;  %3038 = vpow2.f32 %v2697_v1  ;;  %v2761_v55 = vadd.f32 %v1289_v54, %v3923_v2  ;;  %v1291_v6 = vpop.f32.mrb[14].mxu0 }
 0x163   : > { %v1654_v44 = vadd.f32 1.0, %v3029_v4  ;;  %v3992_v5 = vadd.f32 %v1291_v6, %v3925_v27  ;;  %v1293_v30 = vpop.f32.mrb[15].mxu0  ;;  %v1494_v27 = vadd.f32 %v3968_v21, %v3988_v23 }
 0x164   : > { %v3031_v31 = vpop.eup %3030  ;;  %v1505_v32 = vadd.f32 %v2761_v55, %v3964_v15  ;;  %v2763_v48 = vadd.f32 %v1293_v30, %v3927_v36 }
 0x165   : > { %3040 = vrcp.f32 %v1654_v44  ;;  %v1655_v20 = vadd.f32 1.0, %v3031_v31 }
 0x166   : > { %v2698_v29 = vmul.f32 -1.442695, %v1505_v32  ;;  %v1507_v12 = vadd.f32 %v2763_v48, %v3964_v15 }
 0x167   : > { %v3033_v2 = vpop.eup %3032  ;;  %3042 = vrcp.f32 %v1655_v20  ;;  %v1500_v20 = vadd.f32 %v3978_v40, %v3988_v23 }
 0x168   : > { %3044 = vpow2.f32 %v2698_v29  ;;  %v2699_v34 = vmul.f32 -1.442695, %v1507_v12  ;;  %v1297_v3 = vpop.f32.mrb[16].mxu0  ;;  %v4001_v37 = vmul.f32 %v3033_v2, %v1492_v11  ;;  %v1502_v12 = vadd.f32 %v3980_v18, %v3988_v23 }
 0x169   : > { %v3035_v25 = vpop.eup %3034  ;;  %v4004_v36 = vadd.f32 %v1297_v3, %v3929_v22  ;;  %v1299_v35 = vpop.f32.mrb[17].mxu0 }
 0x16a   : > { %v3037_v38 = vpop.eup %3036  ;;  %3046 = vpow2.f32 %v2699_v34  ;;  %v2765_v17 = vadd.f32 %v1299_v35, %v3931_v56  ;;  %v1301_v39 = vpop.f32.mrb[18].mxu0  ;;  %1780 = vadd.xlane.f32.xlu0 %v4001_v37  ;;  %v4008_v42 = vmul.f32 %v3035_v25, %v1494_v27  ;;  %v1877_v19 = vmul.f32 %v4001_v37, %v4001_v37 }
 0x16b   : > { %v1656_v21 = vadd.f32 1.0, %v3037_v38  ;;  %v4011_v43 = vadd.f32 %v1301_v39, %v3933_v24  ;;  %v1303_v14 = vpop.f32.mrb[19].mxu0 }
 0x16c   : > { %v3039_v16 = vpop.eup %3038  ;;  %v1509_v47 = vadd.f32 %v2765_v17, %v3964_v15  ;;  %v2767_v22 = vadd.f32 %v1303_v14, %v3935_v26  ;;  %v1878_v45 = vmul.f32 %v4008_v42, %v4008_v42 }
 0x16d   : > { %3048 = vrcp.f32 %v1656_v21  ;;  %v1657_v56 = vadd.f32 1.0, %v3039_v16 }
 0x16e   : > { %v2700_v51 = vmul.f32 -1.442695, %v1509_v47  ;;  %v1511_v63 = vadd.f32 %v2767_v22, %v3964_v15  ;;  %1782 = vadd.xlane.f32.xlu0 %v4008_v42  ;;  %1911 = vadd.xlane.f32.xlu1 %v1878_v45  ;;  %v1504_v45 = vadd.f32 %v3986_v28, %v3988_v23 }
 0x16f   : > { %v3041_v24 = vpop.eup %3040  ;;  %3050 = vrcp.f32 %v1657_v56 }
 0x170   : > { %3052 = vpow2.f32 %v2700_v51  ;;  %v2701_v26 = vmul.f32 -1.442695, %v1511_v63  ;;  %v1307_v13 = vpop.f32.mrb[20].mxu0  ;;  %v4025_v8 = vmul.f32 %v3041_v24, %v1496_v49  ;;  %v1506_v51 = vadd.f32 %v3992_v5, %v3988_v23 }
 0x171   : > { %v3043_v10 = vpop.eup %3042  ;;  %v4028_v1 = vadd.f32 %v1307_v13, %v3937_v52  ;;  %v1309_v53 = vpop.f32.mrb[21].mxu0 }
 0x172   : > { %v3045_v54 = vpop.eup %3044  ;;  %3054 = vpow2.f32 %v2701_v26  ;;  %v2769_v4 = vadd.f32 %v1309_v53, %v3939_v57  ;;  %v1311_v55 = vpop.f32.mrb[22].mxu0  ;;  %1909 = vadd.xlane.f32.xlu0 %v1877_v19  ;;  %1784 = vadd.xlane.f32.xlu1 %v4025_v8  ;;  %v4032_v46 = vmul.f32 %v3043_v10, %v1498_v9  ;;  %v1879_v48 = vmul.f32 %v4025_v8, %v4025_v8 }
 0x173   : > { %v1658_v6 = vadd.f32 1.0, %v3045_v54  ;;  %v4035_v44 = vadd.f32 %v1311_v55, %v3941_v59  ;;  %v1313_v30 = vpop.f32.mrb[23].mxu0 }
 0x174   : > { %v3047_v31 = vpop.eup %3046  ;;  %v1513_v52 = vadd.f32 %v2769_v4, %v3964_v15  ;;  %v2771_v32 = vadd.f32 %v1313_v30, %v3943_v33  ;;  %v1880_v27 = vmul.f32 %v4032_v46, %v4032_v46 }
 0x175   : > { %3056 = vrcp.f32 %v1658_v6  ;;  %v1659_v57 = vadd.f32 1.0, %v3047_v31 }
 0x176   : > { %v2702_v11 = vmul.f32 -1.442695, %v1513_v52  ;;  %v1515_v29 = vadd.f32 %v2771_v32, %v3964_v15  ;;  %1913 = vadd.xlane.f32.xlu0 %v1879_v48  ;;  %1786 = vadd.xlane.f32.xlu1 %v4032_v46  ;;  %v1508_v52 = vadd.f32 %v4004_v36, %v3988_v23 }
 0x177   : > { %v3049_v59 = vpop.eup %3048  ;;  %3058 = vrcp.f32 %v1659_v57  ;;  %v1510_v57 = vadd.f32 %v4011_v43, %v3988_v23 }
 0x178   : > { %3060 = vpow2.f32 %v2702_v11  ;;  %v2703_v33 = vmul.f32 -1.442695, %v1515_v29  ;;  %v1317_v2 = vpop.f32.mrb[24].mxu0  ;;  %v4049_v34 = vmul.f32 %v3049_v59, %v1500_v20 }
 0x179   : > { %v3051_v40 = vpop.eup %3050  ;;  %v4052_v3 = vadd.f32 %v1317_v2, %v3945_v60  ;;  %v1319_v25 = vpop.f32.mrb[25].mxu0 }
 0x17a   : > { %v3053_v35 = vpop.eup %3052  ;;  %3062 = vpow2.f32 %v2703_v33  ;;  %v2773_v38 = vadd.f32 %v1319_v25, %v3947_v41  ;;  %v1321_v17 = vpop.f32.mrb[26].mxu0  ;;  %1915 = vadd.xlane.f32.xlu1 %v1880_v27  ;;  %1788 = vadd.xlane.f32.xlu0 %v4049_v34  ;;  %v4056_v18 = vmul.f32 %v3051_v40, %v1502_v12  ;;  %v1881_v22 = vmul.f32 %v4049_v34, %v4049_v34 }
 0x17b   : > { %v1660_v39 = vadd.f32 1.0, %v3053_v35  ;;  %v4059_v21 = vadd.f32 %v1321_v17, %v3949_v61  ;;  %v1323_v14 = vpop.f32.mrb[27].mxu0 }
 0x17c   : > { %v3055_v16 = vpop.eup %3054  ;;  %v1517_v60 = vadd.f32 %v2773_v38, %v3964_v15  ;;  %v2775_v47 = vadd.f32 %v1323_v14, %v3951_v62  ;;  %v1882_v24 = vmul.f32 %v4056_v18, %v4056_v18 }
 0x17d   : > { %3064 = vrcp.f32 %v1660_v39  ;;  %v1661_v41 = vadd.f32 1.0, %v3055_v16 }
 0x17e   : > { %v2704_v56 = vmul.f32 -1.442695, %v1517_v60  ;;  %v1519_v49 = vadd.f32 %v2775_v47, %v3964_v15  ;;  %1917 = vadd.xlane.f32.xlu0 %v1881_v22  ;;  %1790 = vadd.xlane.f32.xlu1 %v4056_v18 }
 0x17f   : > { %v3057_v61 = vpop.eup %3056  ;;  %3066 = vrcp.f32 %v1661_v41 }
 0x180   : > { %3068 = vpow2.f32 %v2704_v56  ;;  %v2705_v62 = vmul.f32 -1.442695, %v1519_v49  ;;  %v1327_v63 = vpop.f32.mrb[28].mxu0  ;;  %v4073_v9 = vmul.f32 %v3057_v61, %v1504_v45  ;;  %v1512_v45 = vadd.f32 %v4028_v1, %v3988_v23 }
 0x181   : > { %v3059_v28 = vpop.eup %3058  ;;  %v4076_v26 = vadd.f32 %v1327_v63, %v3953_v50  ;;  %v1329_v13 = vpop.f32.mrb[29].mxu0 }
 0x182   : > { %v3061_v19 = vpop.eup %3060  ;;  %3070 = vpow2.f32 %v2705_v62  ;;  %v2777_v10 = vadd.f32 %v1329_v13, %v3955_v58  ;;  %v1331_v53 = vpop.f32.mrb[30].mxu0  ;;  %1919 = vadd.xlane.f32.xlu1 %v1882_v24  ;;  %1792 = vadd.xlane.f32.xlu0 %v4073_v9  ;;  %v4080_v5 = vmul.f32 %v3059_v28, %v1506_v51  ;;  %v1883_v31 = vmul.f32 %v4073_v9, %v4073_v9 }
 0x183   : > { %v1662_v54 = vadd.f32 1.0, %v3061_v19  ;;  %v4083_v4 = vadd.f32 %v1331_v53, %v3957_v0  ;;  %v1333_v55 = vpop.f32.mrb[31].mxu0  ;;  %v1514_v51 = vadd.f32 %v4035_v44, %v3988_v23 }
 0x184   : > { %v3063_v6 = vpop.eup %3062  ;;  %v1521_v50 = vadd.f32 %v2777_v10, %v3964_v15  ;;  %v2779_v30 = vadd.f32 %v1333_v55, %v3959_v7  ;;  %v1884_v29 = vmul.f32 %v4080_v5, %v4080_v5 }
 0x185   : > { %3072 = vrcp.f32 %v1662_v54  ;;  %v1663_v58 = vadd.f32 1.0, %v3063_v6 }
 0x186   : > { %v2706_v32 = vmul.f32 -1.442695, %v1521_v50  ;;  %v1523_v48 = vadd.f32 %v2779_v30, %v3964_v15  ;;  %1921 = vadd.xlane.f32.xlu0 %v1883_v31  ;;  %1794 = vadd.xlane.f32.xlu1 %v4080_v5 }
 0x187   : > { %v3065_v0 = vpop.eup %3064  ;;  %3074 = vrcp.f32 %v1663_v58 }
 0x188   : > { %3076 = vpow2.f32 %v2706_v32  ;;  %v2707_v7 = vmul.f32 -1.442695, %v1523_v48  ;;  %v980_v20 = vpop.f32.mrb[32].mxu1  ;;  %v1337_v11 = vpop.f32.mrb[32].mxu0  ;;  %v4097_v59 = vmul.f32 %v3065_v0, %v1508_v52 }
 0x189   : > { %v3067_v36 = vpop.eup %3066  ;;  %v4099_v12 = vadd.f32 %v1337_v11, %v980_v20  ;;  %v982_v33 = vpop.f32.mrb[33].mxu1  ;;  %v1516_v20 = vadd.f32 %v4052_v3, %v3988_v23 }
 0x18a   : > { %v1339_v2 = vpop.f32.mrb[33].mxu0  ;;  %v3069_v27 = vpop.eup %3068  ;;  %3078 = vpow2.f32 %v2707_v7  ;;  %1923 = vadd.xlane.f32.xlu1 %v1884_v29  ;;  %1796 = vadd.xlane.f32.xlu0 %v4097_v59  ;;  %v4102_v35 = vmul.f32 %v3067_v36, %v1510_v57  ;;  %v1885_v22 = vmul.f32 %v4097_v59, %v4097_v59 }
 0x18b   : > { %v2781_v40 = vadd.f32 %v1339_v2, %v982_v33  ;;  %v1341_v25 = vpop.f32.mrb[34].mxu0  ;;  %v984_v43 = vpop.f32.mrb[34].mxu1  ;;  %v1664_v38 = vadd.f32 1.0, %v3069_v27  ;;  %v1518_v33 = vadd.f32 %v4059_v21, %v3988_v23 }
 0x18c   : > { %v4104_v17 = vadd.f32 %v1341_v25, %v984_v43  ;;  %v986_v39 = vpop.f32.mrb[35].mxu1  ;;  %v1343_v14 = vpop.f32.mrb[35].mxu0  ;;  %v1886_v28 = vmul.f32 %v4102_v35, %v4102_v35 }
 0x18d   : > { %v3071_v16 = vpop.eup %3070  ;;  %v1525_v60 = vadd.f32 %v2781_v40, %v3964_v15  ;;  %v2783_v47 = vadd.f32 %v1343_v14, %v986_v39  ;;  %3080 = vrcp.f32 %v1664_v38 }
 0x18e   : > { %v1665_v41 = vadd.f32 1.0, %v3071_v16  ;;  %1925 = vadd.xlane.f32.xlu0 %v1885_v22  ;;  %1798 = vadd.xlane.f32.xlu1 %v4102_v35 }
 0x18f   : > { %v2708_v56 = vmul.f32 -1.442695, %v1525_v60  ;;  %v1527_v49 = vadd.f32 %v2783_v47, %v3964_v15  ;;  %v3073_v61 = vpop.eup %3072 }
 0x190   : > { %3082 = vrcp.f32 %v1665_v41  ;;  %v990_v63 = vpop.f32.mrb[36].mxu1  ;;  %v1347_v24 = vpop.f32.mrb[36].mxu0  ;;  %v4117_v13 = vmul.f32 %v3073_v61, %v1512_v45 }
 0x191   : > { %3084 = vpow2.f32 %v2708_v56  ;;  %v2709_v62 = vmul.f32 -1.442695, %v1527_v49  ;;  %v3075_v1 = vpop.eup %3074  ;;  %v4119_v19 = vadd.f32 %v1347_v24, %v990_v63  ;;  %v992_v10 = vpop.f32.mrb[37].mxu1 }
 0x192   : > { %v1349_v53 = vpop.f32.mrb[37].mxu0  ;;  %v3077_v54 = vpop.eup %3076  ;;  %1927 = vadd.xlane.f32.xlu1 %v1886_v28  ;;  %1800 = vadd.xlane.f32.xlu0 %v4117_v13  ;;  %v4122_v50 = vmul.f32 %v3075_v1, %v1514_v51  ;;  %v1887_v57 = vmul.f32 %v4117_v13, %v4117_v13  ;;  %v1520_v28 = vadd.f32 %v4076_v26, %v3988_v23 }
 0x193   : > { %3086 = vpow2.f32 %v2709_v62  ;;  %v2785_v55 = vadd.f32 %v1349_v53, %v992_v10  ;;  %v1351_v6 = vpop.f32.mrb[38].mxu0  ;;  %v994_v44 = vpop.f32.mrb[38].mxu1  ;;  %v1666_v30 = vadd.f32 1.0, %v3077_v54  ;;  %v1522_v54 = vadd.f32 %v4083_v4, %v3988_v23 }
 0x194   : > { %v4124_v31 = vadd.f32 %v1351_v6, %v994_v44  ;;  %v996_v58 = vpop.f32.mrb[39].mxu1  ;;  %v1353_v52 = vpop.f32.mrb[39].mxu0  ;;  %v1888_v25 = vmul.f32 %v4122_v50, %v4122_v50 }
 0x195   : > { %v3079_v32 = vpop.eup %3078  ;;  %v1529_v48 = vadd.f32 %v2785_v55, %v3964_v15  ;;  %v2787_v0 = vadd.f32 %v1353_v52, %v996_v58  ;;  %3088 = vrcp.f32 %v1666_v30 }
 0x196   : > { %v1667_v7 = vadd.f32 1.0, %v3079_v32  ;;  %1929 = vadd.xlane.f32.xlu0 %v1887_v57  ;;  %1802 = vadd.xlane.f32.xlu1 %v4122_v50 }
 0x197   : > { %v2710_v11 = vmul.f32 -1.442695, %v1529_v48  ;;  %v1531_v29 = vadd.f32 %v2787_v0, %v3964_v15  ;;  %v3081_v36 = vpop.eup %3080 }
 0x198   : > { %3090 = vrcp.f32 %v1667_v7  ;;  %v1000_v27 = vpop.f32.mrb[40].mxu1  ;;  %v1357_v40 = vpop.f32.mrb[40].mxu0  ;;  %v4137_v43 = vmul.f32 %v3081_v36, %v1516_v20 }
 0x199   : > { %3092 = vpow2.f32 %v2710_v11  ;;  %v2711_v2 = vmul.f32 -1.442695, %v1531_v29  ;;  %v4139_v38 = vadd.f32 %v1357_v40, %v1000_v27  ;;  %v1002_v39 = vpop.f32.mrb[41].mxu1  ;;  %v1359_v14 = vpop.f32.mrb[41].mxu0 }
 0x19a   : > { %v3083_v3 = vpop.eup %3082  ;;  %v2789_v60 = vadd.f32 %v1359_v14, %v1002_v39  ;;  %v1361_v47 = vpop.f32.mrb[42].mxu0  ;;  %1931 = vadd.xlane.f32.xlu1 %v1888_v25  ;;  %1804 = vadd.xlane.f32.xlu0 %v4137_v43  ;;  %v1889_v63 = vmul.f32 %v4137_v43, %v4137_v43  ;;  %v1524_v39 = vadd.f32 %v4099_v12, %v3988_v23 }
 0x19b   : > { %v3085_v16 = vpop.eup %3084  ;;  %3094 = vpow2.f32 %v2711_v2  ;;  %v1004_v21 = vpop.f32.mrb[42].mxu1  ;;  %v4142_v22 = vmul.f32 %v3083_v3, %v1518_v33 }
 0x19c   : > { %v1668_v41 = vadd.f32 1.0, %v3085_v16  ;;  %v4144_v45 = vadd.f32 %v1361_v47, %v1004_v21  ;;  %v1006_v56 = vpop.f32.mrb[43].mxu1  ;;  %v1363_v49 = vpop.f32.mrb[43].mxu0  ;;  %v1533_v51 = vadd.f32 %v2789_v60, %v3964_v15  ;;  %v1526_v47 = vadd.f32 %v4104_v17, %v3988_v23 }
 0x19d   : > { %v3087_v61 = vpop.eup %3086  ;;  %v2791_v62 = vadd.f32 %v1363_v49, %v1006_v56  ;;  %v1890_v30 = vmul.f32 %v4142_v22, %v4142_v22 }
 0x19e   : > { %3096 = vrcp.f32 %v1668_v41  ;;  %v1669_v24 = vadd.f32 1.0, %v3087_v61  ;;  %v2712_v1 = vmul.f32 -1.442695, %v1533_v51  ;;  %1933 = vadd.xlane.f32.xlu0 %v1889_v63  ;;  %1806 = vadd.xlane.f32.xlu1 %v4142_v22 }
 0x19f   : > { %v1535_v10 = vadd.f32 %v2791_v62, %v3964_v15  ;;  %v3089_v53 = vpop.eup %3088 }
 0x1a0   : > { %3098 = vrcp.f32 %v1669_v24  ;;  %v1010_v6 = vpop.f32.mrb[44].mxu1  ;;  %v1367_v44 = vpop.f32.mrb[44].mxu0  ;;  %v4157_v58 = vmul.f32 %v3089_v53, %v1520_v28 }
 0x1a1   : > { %3100 = vpow2.f32 %v2712_v1  ;;  %v2713_v55 = vmul.f32 -1.442695, %v1535_v10  ;;  %v4159_v52 = vadd.f32 %v1367_v44, %v1010_v6  ;;  %v1012_v32 = vpop.f32.mrb[45].mxu1  ;;  %v1369_v48 = vpop.f32.mrb[45].mxu0 }
 0x1a2   : > { %v3091_v26 = vpop.eup %3090  ;;  %v2793_v57 = vadd.f32 %v1369_v48, %v1012_v32  ;;  %v1371_v7 = vpop.f32.mrb[46].mxu0  ;;  %1935 = vadd.xlane.f32.xlu1 %v1890_v30  ;;  %1808 = vadd.xlane.f32.xlu0 %v4157_v58  ;;  %v1891_v25 = vmul.f32 %v4157_v58, %v4157_v58 }
 0x1a3   : > { %v3093_v0 = vpop.eup %3092  ;;  %3102 = vpow2.f32 %v2713_v55  ;;  %v1014_v4 = vpop.f32.mrb[46].mxu1  ;;  %v4162_v20 = vmul.f32 %v3091_v26, %v1522_v54 }
 0x1a4   : > { %v1670_v11 = vadd.f32 1.0, %v3093_v0  ;;  %v4164_v29 = vadd.f32 %v1371_v7, %v1014_v4  ;;  %v1016_v36 = vpop.f32.mrb[47].mxu1  ;;  %v1373_v33 = vpop.f32.mrb[47].mxu0  ;;  %v1537_v27 = vadd.f32 %v2793_v57, %v3964_v15  ;;  %v1528_v0 = vadd.f32 %v4119_v19, %v3988_v23 }
 0x1a5   : > { %v3095_v2 = vpop.eup %3094  ;;  %v2795_v40 = vadd.f32 %v1373_v33, %v1016_v36  ;;  %v1892_v49 = vmul.f32 %v4162_v20, %v4162_v20 }
 0x1a6   : > { %3104 = vrcp.f32 %v1670_v11  ;;  %v1671_v3 = vadd.f32 1.0, %v3095_v2  ;;  %v2714_v14 = vmul.f32 -1.442695, %v1537_v27  ;;  %1937 = vadd.xlane.f32.xlu0 %v1891_v25  ;;  %1810 = vadd.xlane.f32.xlu1 %v4162_v20  ;;  %v1530_v11 = vadd.f32 %v4124_v31, %v3988_v23 }
 0x1a7   : > { %v1539_v16 = vadd.f32 %v2795_v40, %v3964_v15 }
 0x1a8   : > { %v3097_v60 = vpop.eup %3096  ;;  %3106 = vrcp.f32 %v1671_v3  ;;  %v1020_v41 = vpop.f32.mrb[48].mxu1 }
 0x1a9   : > { %3108 = vpow2.f32 %v2714_v14  ;;  %v2715_v21 = vmul.f32 -1.442695, %v1539_v16  ;;  %v1377_v56 = vpop.f32.mrb[48].mxu0  ;;  %v4177_v61 = vmul.f32 %v3097_v60, %v1524_v39  ;;  %v1022_v62 = vpop.f32.mrb[49].mxu1 }
 0x1aa   : > { %v3099_v12 = vpop.eup %3098  ;;  %v4179_v51 = vadd.f32 %v1377_v56, %v1020_v41  ;;  %v1379_v63 = vpop.f32.mrb[49].mxu0  ;;  %1939 = vadd.xlane.f32.xlu1 %v1892_v49 }
 0x1ab   : > { %v3101_v24 = vpop.eup %3100  ;;  %3110 = vpow2.f32 %v2715_v21  ;;  %v2797_v28 = vadd.f32 %v1379_v63, %v1022_v62  ;;  %v1381_v1 = vpop.f32.mrb[50].mxu0  ;;  %1812 = vadd.xlane.f32.xlu0 %v4177_v61  ;;  %v4182_v10 = vmul.f32 %v3099_v12, %v1526_v47  ;;  %v1893_v32 = vmul.f32 %v4177_v61, %v4177_v61 }
 0x1ac   : > { %v1024_v17 = vpop.f32.mrb[50].mxu1  ;;  %v1672_v53 = vadd.f32 1.0, %v3101_v24  ;;  %v1383_v6 = vpop.f32.mrb[51].mxu0 }
 0x1ad   : > { %v4184_v54 = vadd.f32 %v1381_v1, %v1024_v17  ;;  %v1026_v55 = vpop.f32.mrb[51].mxu1  ;;  %v3103_v44 = vpop.eup %3102  ;;  %v1541_v30 = vadd.f32 %v2797_v28, %v3964_v15  ;;  %v1894_v27 = vmul.f32 %v4182_v10, %v4182_v10  ;;  %v1532_v1 = vadd.f32 %v4139_v38, %v3988_v23 }
 0x1ae   : > { %v2799_v26 = vadd.f32 %v1383_v6, %v1026_v55  ;;  %3112 = vrcp.f32 %v1672_v53  ;;  %v1673_v48 = vadd.f32 1.0, %v3103_v44  ;;  %1814 = vadd.xlane.f32.xlu1 %v4182_v10  ;;  %v1534_v6 = vadd.f32 %v4144_v45, %v3988_v23 }
 0x1af   : > { %v2716_v57 = vmul.f32 -1.442695, %v1541_v30  ;;  %1941 = vadd.xlane.f32.xlu0 %v1893_v32 }
 0x1b0   : > { %v1543_v7 = vadd.f32 %v2799_v26, %v3964_v15  ;;  %v3105_v4 = vpop.eup %3104  ;;  %3114 = vrcp.f32 %v1673_v48  ;;  %v1030_v33 = vpop.f32.mrb[52].mxu1 }
 0x1b1   : > { %3116 = vpow2.f32 %v2716_v57  ;;  %v1387_v2 = vpop.f32.mrb[52].mxu0  ;;  %v4197_v40 = vmul.f32 %v3105_v4, %v1528_v0  ;;  %v1032_v3 = vpop.f32.mrb[53].mxu1 }
 0x1b2   : > { %v2717_v36 = vmul.f32 -1.442695, %v1543_v7  ;;  %v3107_v19 = vpop.eup %3106  ;;  %v4199_v25 = vadd.f32 %v1387_v2, %v1030_v33  ;;  %v1389_v39 = vpop.f32.mrb[53].mxu0  ;;  %1943 = vadd.xlane.f32.xlu1 %v1894_v27 }
 0x1b3   : > { %v3109_v14 = vpop.eup %3108  ;;  %v2801_v16 = vadd.f32 %v1389_v39, %v1032_v3  ;;  %v1391_v60 = vpop.f32.mrb[54].mxu0  ;;  %1816 = vadd.xlane.f32.xlu0 %v4197_v40  ;;  %v4202_v47 = vmul.f32 %v3107_v19, %v1530_v11  ;;  %v1895_v24 = vmul.f32 %v4197_v40, %v4197_v40 }
 0x1b4   : > { %3118 = vpow2.f32 %v2717_v36  ;;  %v1034_v31 = vpop.f32.mrb[54].mxu1  ;;  %v1674_v21 = vadd.f32 1.0, %v3109_v14  ;;  %v1393_v49 = vpop.f32.mrb[55].mxu0 }
 0x1b5   : > { %v4204_v41 = vadd.f32 %v1391_v60, %v1034_v31  ;;  %v1036_v56 = vpop.f32.mrb[55].mxu1  ;;  %v3111_v12 = vpop.eup %3110  ;;  %v1545_v62 = vadd.f32 %v2801_v16, %v3964_v15  ;;  %v1896_v32 = vmul.f32 %v4202_v47, %v4202_v47 }
 0x1b6   : > { %v2803_v63 = vadd.f32 %v1393_v49, %v1036_v56  ;;  %3120 = vrcp.f32 %v1674_v21  ;;  %v1675_v28 = vadd.f32 1.0, %v3111_v12  ;;  %1818 = vadd.xlane.f32.xlu1 %v4202_v47  ;;  %v1536_v21 = vadd.f32 %v4159_v52, %v3988_v23 }
 0x1b7   : > { %v2718_v17 = vmul.f32 -1.442695, %v1545_v62  ;;  %1945 = vadd.xlane.f32.xlu0 %v1895_v24  ;;  %v1538_v62 = vadd.f32 %v4164_v29, %v3988_v23 }
 0x1b8   : > { %v1547_v53 = vadd.f32 %v2803_v63, %v3964_v15  ;;  %v3113_v55 = vpop.eup %3112  ;;  %3122 = vrcp.f32 %v1675_v28  ;;  %v1040_v30 = vpop.f32.mrb[56].mxu1 }
 0x1b9   : > { %3124 = vpow2.f32 %v2718_v17  ;;  %v1397_v26 = vpop.f32.mrb[56].mxu0  ;;  %v4217_v48 = vmul.f32 %v3113_v55, %v1532_v1  ;;  %v1042_v57 = vpop.f32.mrb[57].mxu1 }
 0x1ba   : > { %v2719_v44 = vmul.f32 -1.442695, %v1547_v53  ;;  %v3115_v38 = vpop.eup %3114  ;;  %v4219_v0 = vadd.f32 %v1397_v26, %v1040_v30  ;;  %v1399_v7 = vpop.f32.mrb[57].mxu0  ;;  %1947 = vadd.xlane.f32.xlu1 %v1896_v32 }
 0x1bb   : > { %v3117_v4 = vpop.eup %3116  ;;  %v2805_v11 = vadd.f32 %v1399_v7, %v1042_v57  ;;  %v1401_v36 = vpop.f32.mrb[58].mxu0  ;;  %1820 = vadd.xlane.f32.xlu0 %v4217_v48  ;;  %v4222_v33 = vmul.f32 %v3115_v38, %v1534_v6  ;;  %v1897_v60 = vmul.f32 %v4217_v48, %v4217_v48 }
 0x1bc   : > { %3126 = vpow2.f32 %v2719_v44  ;;  %v1044_v45 = vpop.f32.mrb[58].mxu1  ;;  %v1676_v2 = vadd.f32 1.0, %v3117_v4  ;;  %v1403_v3 = vpop.f32.mrb[59].mxu0 }
 0x1bd   : > { %v4224_v27 = vadd.f32 %v1401_v36, %v1044_v45  ;;  %v1046_v19 = vpop.f32.mrb[59].mxu1  ;;  %v1549_v14 = vadd.f32 %v2805_v11, %v3964_v15  ;;  %v1898_v1 = vmul.f32 %v4222_v33, %v4222_v33 }
 0x1be   : > { %v3119_v39 = vpop.eup %3118  ;;  %v2807_v16 = vadd.f32 %v1403_v3, %v1046_v19  ;;  %3128 = vrcp.f32 %v1676_v2  ;;  %1822 = vadd.xlane.f32.xlu1 %v4222_v33  ;;  %v1540_v3 = vadd.f32 %v4179_v51, %v3988_v23 }
 0x1bf   : > { %v1677_v31 = vadd.f32 1.0, %v3119_v39  ;;  %v2720_v56 = vmul.f32 -1.442695, %v1549_v14  ;;  %1949 = vadd.xlane.f32.xlu0 %v1897_v60  ;;  %v1542_v60 = vadd.f32 %v4184_v54, %v3988_v23 }
 0x1c0   : > { %v1551_v49 = vadd.f32 %v2807_v16, %v3964_v15  ;;  %v3121_v12 = vpop.eup %3120  ;;  %v1050_v24 = vpop.f32.mrb[60].mxu1 }
 0x1c1   : > { %3130 = vrcp.f32 %v1677_v31  ;;  %v1407_v28 = vpop.f32.mrb[60].mxu0  ;;  %v4237_v17 = vmul.f32 %v3121_v12, %v1536_v21  ;;  %v1052_v55 = vpop.f32.mrb[61].mxu1 }
 0x1c2   : > { %3132 = vpow2.f32 %v2720_v56  ;;  %v2721_v63 = vmul.f32 -1.442695, %v1551_v49  ;;  %v3123_v52 = vpop.eup %3122  ;;  %v4239_v53 = vadd.f32 %v1407_v28, %v1050_v24  ;;  %v1409_v6 = vpop.f32.mrb[61].mxu0  ;;  %1951 = vadd.xlane.f32.xlu1 %v1898_v1  ;;  %v1544_v24 = vadd.f32 %v4199_v25, %v3988_v23 }
 0x1c3   : > { %v3125_v44 = vpop.eup %3124  ;;  %v2809_v30 = vadd.f32 %v1409_v6, %v1052_v55  ;;  %v1411_v26 = vpop.f32.mrb[62].mxu0  ;;  %1824 = vadd.xlane.f32.xlu0 %v4237_v17  ;;  %v4242_v32 = vmul.f32 %v3123_v52, %v1538_v62  ;;  %v1899_v2 = vmul.f32 %v4237_v17, %v4237_v17  ;;  %v1546_v1 = vadd.f32 %v4204_v41, %v3988_v23 }
 0x1c4   : > { %3134 = vpow2.f32 %v2721_v63  ;;  %v1054_v29 = vpop.f32.mrb[62].mxu1  ;;  %v1678_v38 = vadd.f32 1.0, %v3125_v44  ;;  %v1413_v4 = vpop.f32.mrb[63].mxu0  ;;  %v1548_v41 = vadd.f32 %v4219_v0, %v3988_v23 }
 0x1c5   : > { %v4244_v57 = vadd.f32 %v1411_v26, %v1054_v29  ;;  %v1056_v7 = vpop.f32.mrb[63].mxu1  ;;  %v1553_v36 = vadd.f32 %v2809_v30, %v3964_v15  ;;  %v1900_v21 = vmul.f32 %v4242_v32, %v4242_v32 }
 0x1c6   : > { %v3127_v11 = vpop.eup %3126  ;;  %v2811_v45 = vadd.f32 %v1413_v4, %v1056_v7  ;;  %3136 = vrcp.f32 %v1678_v38  ;;  %1826 = vadd.xlane.f32.xlu1 %v4242_v32  ;;  %v1550_v4 = vadd.f32 %v4224_v27, %v3988_v23 }
 0x1c7   : > { %v1679_v19 = vadd.f32 1.0, %v3127_v11  ;;  %v2722_v39 = vmul.f32 -1.442695, %v1553_v36  ;;  %1953 = vadd.xlane.f32.xlu0 %v1899_v2 }
 0x1c8   : > { %v1555_v14 = vadd.f32 %v2811_v45, %v3964_v15  ;;  %v3129_v16 = vpop.eup %3128 }
 0x1c9   : > { %3138 = vrcp.f32 %v1679_v19  ;;  %v4257_v56 = vmul.f32 %v3129_v16, %v1540_v3  ;;  %v1552_v19 = vadd.f32 %v4239_v53, %v3988_v23  ;;  %v1554_v3 = vadd.f32 %v4244_v57, %v3988_v23 }
 0x1ca   : > { %3140 = vpow2.f32 %v2722_v39  ;;  %v2723_v31 = vmul.f32 -1.442695, %v1555_v14  ;;  %1955 = vadd.xlane.f32.xlu1 %v1900_v21 }
 0x1cb   : > { %v3131_v49 = vpop.eup %3130  ;;  %1828 = vadd.xlane.f32.xlu0 %v4257_v56  ;;  %v1901_v54 = vmul.f32 %v4257_v56, %v4257_v56 }
 0x1cc   : > { %v3133_v51 = vpop.eup %3132  ;;  %3142 = vpow2.f32 %v2723_v31  ;;  %v4260_v15 = vmul.f32 %v3131_v49, %v1542_v60 }
 0x1cd   : > { %v1680_v12 = vadd.f32 1.0, %v3133_v51 }
 0x1ce   : > { %v3135_v62 = vpop.eup %3134  ;;  %1830 = vadd.xlane.f32.xlu1 %v4260_v15  ;;  %v1902_v52 = vmul.f32 %v4260_v15, %v4260_v15 }
 0x1cf   : > { %3144 = vrcp.f32 %v1680_v12  ;;  %v1681_v63 = vadd.f32 1.0, %v3135_v62  ;;  %1957 = vadd.xlane.f32.xlu0 %v1901_v54 }
 0x1d0   : > { %v3137_v28 = vpop.eup %3136 }
 0x1d1   : > { %3146 = vrcp.f32 %v1681_v63  ;;  %v4271_v55 = vmul.f32 %v3137_v28, %v1544_v24 }
 0x1d2   : > { %1959 = vadd.xlane.f32.xlu1 %v1902_v52 }
 0x1d3   : > { %v3139_v6 = vpop.eup %3138  ;;  %1832 = vadd.xlane.f32.xlu0 %v4271_v55  ;;  %v1903_v29 = vmul.f32 %v4271_v55, %v4271_v55 }
 0x1d4   : > { %v3141_v44 = vpop.eup %3140  ;;  %v4274_v30 = vmul.f32 %v3139_v6, %v1546_v1 }
 0x1d5   : > { %v1682_v25 = vadd.f32 1.0, %v3141_v44 }
 0x1d6   : > { %v3143_v26 = vpop.eup %3142  ;;  %1834 = vadd.xlane.f32.xlu1 %v4274_v30  ;;  %v1904_v11 = vmul.f32 %v4274_v30, %v4274_v30 }
 0x1d7   : > { %3148 = vrcp.f32 %v1682_v25  ;;  %v1683_v38 = vadd.f32 1.0, %v3143_v26  ;;  %1961 = vadd.xlane.f32.xlu0 %v1903_v29 }
 0x1d9   : > { %v3145_v7 = vpop.eup %3144  ;;  %3150 = vrcp.f32 %v1683_v38 }
 0x1da   : > { %v4285_v36 = vmul.f32 %v3145_v7, %v1548_v41  ;;  %1963 = vadd.xlane.f32.xlu1 %v1904_v11 }
 0x1db   : > { %v3147_v45 = vpop.eup %3146 }
 0x1dc   : > { %1836 = vadd.xlane.f32.xlu0 %v4285_v36  ;;  %v4288_v2 = vmul.f32 %v3147_v45, %v1550_v4  ;;  %v1905_v0 = vmul.f32 %v4285_v36, %v4285_v36 }
 0x1de   : > { %1838 = vadd.xlane.f32.xlu1 %v4288_v2  ;;  %v1906_v39 = vmul.f32 %v4288_v2, %v4288_v2 }
 0x1e0   : > { %1965 = vadd.xlane.f32.xlu0 %v1905_v0 }
 0x1e1   : > { %v3149_v27 = vpop.eup %3148 }
 0x1e2   : > { %v4299_v14 = vmul.f32 %v3149_v27, %v1552_v19  ;;  %1967 = vadd.xlane.f32.xlu1 %v1906_v39 }
 0x1e3   : > { %v3151_v16 = vpop.eup %3150 }
 0x1e4   : > { %1840 = vadd.xlane.f32.xlu0 %v4299_v14  ;;  %v4302_v60 = vmul.f32 %v3151_v16, %v1554_v3  ;;  %v1907_v53 = vmul.f32 %v4299_v14, %v4299_v14 }
 0x1e6   : > { %1842 = vadd.xlane.f32.xlu1 %v4302_v60  ;;  %v1908_v23 = vmul.f32 %v4302_v60, %v4302_v60 }
 0x1e8   : > { %1969 = vadd.xlane.f32.xlu0 %v1907_v53 }
 0x1ea   : > { %1971 = vadd.xlane.f32.xlu1 %v1908_v23 }
 0x1f7   : > { %v1781_v57 = vpop.xlane.xlu0 %1780 }
 0x1f8   : > { %v1845_v49 = vmul.f32 0.0078125, %v1781_v57 }
 0x1fa   : > { %v2005_v24 = vmul.f32 %v1845_v49, %v1845_v49 }
 0x1fb   : > { %v1783_v31 = vpop.xlane.xlu0 %1782  ;;  %v1912_v21 = vpop.xlane.xlu1 %1911 }
 0x1fc   : > { %v1846_v51 = vmul.f32 0.0078125, %v1783_v31  ;;  %v1974_v62 = vmul.f32 0.0078125, %v1912_v21 }
 0x1fe   : > { %v2006_v12 = vmul.f32 %v1846_v51, %v1846_v51 }
 0x1ff   : > { %v1910_v54 = vpop.xlane.xlu0 %1909  ;;  %v1785_v63 = vpop.xlane.xlu1 %1784 }
 0x200   : > { %v2038_v28 = vsub.f32 %v1974_v62, %v2006_v12  ;;  %v1973_v1 = vmul.f32 0.0078125, %v1910_v54  ;;  %v1847_v52 = vmul.f32 0.0078125, %v1785_v63  ;;  %v2070_v12 = vsub.f32 %v4008_v42, %v1846_v51  ;;  %v4323_v54 = vld [vmem:[%s4768_s3] ss:$0 sm:$0xff] }
 0x202   : > { %v2102_v6 = vadd.f32 1e-05, %v2038_v28  ;;  %v2037_v44 = vsub.f32 %v1973_v1, %v2005_v24  ;;  %v2007_v25 = vmul.f32 %v1847_v52, %v1847_v52  ;;  %v2069_v24 = vsub.f32 %v4001_v37, %v1845_v49 }
 0x203   : > { %v1914_v26 = vpop.xlane.xlu0 %1913  ;;  %v1787_v29 = vpop.xlane.xlu1 %1786  ;;  %v4336_v49 = vstv %s2275_s7  ;;  %s3348_s7 = smov [#allocation3]  }
 0x204   : > { %3152 = vrsqrt.f32 %v2102_v6  ;;  %v2101_v38 = vadd.f32 1e-05, %v2037_v44  ;;  %v1975_v41 = vmul.f32 0.0078125, %v1914_v26  ;;  %v4309_v7 = vmul.f32 0.0078125, %v1787_v29  ;;  %s3255_s22 = sshll.u32 %s3348_s7, 4  ;;  %s3256_s22 = int_to_ptr.vmem [resolvable:$false] %s3255_s22 }
 0x205   : > { %s3257_s15 = scalar_lea.vmem %s3256_s22, 8192  ;;  %p3258_p4 = scmp.lt.s32.totalorder %s4706_s27, %s3256_s22 }
 0x206   : > { %3154 = vrsqrt.f32 %v2101_v38  ;;  %v2039_v4 = vsub.f32 %v1975_v41, %v2007_v25  ;;  %v2008_v19 = vmul.f32 %v4309_v7, %v4309_v7  ;;  %v4329_v25 = vld [vmem:[%s4769_s4] ss:$0 sm:$0xff]  ;;  %p3259_p5 = scmp.lt.s32.totalorder %s3257_s15, %s3251_s5 }
 0x207   : > { %v1916_v11 = vpop.xlane.xlu1 %1915  ;;  %v1789_v45 = vpop.xlane.xlu0 %1788 }
 0x208   : > { %v2103_v0 = vadd.f32 1e-05, %v2039_v4  ;;  %v1976_v27 = vmul.f32 0.0078125, %v1916_v11  ;;  %v4313_v3 = vmul.f32 0.0078125, %v1789_v45  ;;  %v2071_v45 = vsub.f32 %v4025_v8, %v1847_v52  ;;  %p3260_p6 = por %p3259_p5, %p3258_p4 }
 0x20a   : > { %3156 = vrsqrt.f32 %v2103_v0  ;;  %v2040_v39 = vsub.f32 %v1976_v27, %v2008_v19  ;;  %v2009_v57 = vmul.f32 %v4313_v3, %v4313_v3  ;;  %p3261_p7 = pnand %p3260_p6, %p3254_p2 }
 0x20b   : > { %v1918_v16 = vpop.xlane.xlu0 %1917  ;;  %v1791_v53 = vpop.xlane.xlu1 %1790 }
 0x20c   : > { %v2104_v23 = vadd.f32 1e-05, %v2040_v39  ;;  %v1977_v31 = vmul.f32 0.0078125, %v1918_v16  ;;  %v4317_v21 = vmul.f32 0.0078125, %v1791_v53 }
 0x20e   : > { %v3153_v62 = vpop.eup %3152  ;;  %3158 = vrsqrt.f32 %v2104_v23  ;;  %v2041_v63 = vsub.f32 %v1977_v31, %v2009_v57  ;;  %v2010_v51 = vmul.f32 %v4317_v21, %v4317_v21 }
 0x20f   : > { %v2166_v28 = vmul.f32 %v3153_v62, %v2070_v12  ;;  %v1920_v1 = vpop.xlane.xlu1 %1919  ;;  %v1793_v6 = vpop.xlane.xlu0 %1792 }
 0x210   : > { %v3155_v44 = vpop.eup %3154  ;;  %v2105_v42 = vadd.f32 1e-05, %v2041_v63  ;;  %v1978_v26 = vmul.f32 0.0078125, %v1920_v1  ;;  %v4333_v29 = vmul.f32 0.0078125, %v1793_v6  ;;  %v2072_v63 = vsub.f32 %v4032_v46, %v4309_v7 }
 0x211   : > { %v2205_v38 = vmul.f32 %v4323_v54, %v2166_v28  ;;  %v2165_v37 = vmul.f32 %v3155_v44, %v2069_v24  ;;  %v2073_v46 = vsub.f32 %v4049_v34, %v4313_v3 }
 0x212   : > { %3160 = vrsqrt.f32 %v2105_v42  ;;  %v2042_v41 = vsub.f32 %v1978_v26, %v2010_v51  ;;  %v2011_v16 = vmul.f32 %v4333_v29, %v4333_v29 }
 0x213   : > { %v2244_v4 = vadd.f32 %v4329_v25, %v2205_v38  ;;  %v2204_v11 = vmul.f32 %v4323_v54, %v2165_v37  ;;  %v1922_v0 = vpop.xlane.xlu0 %1921  ;;  %v1795_v19 = vpop.xlane.xlu1 %1794 }
 0x214   : > { %v3157_v27 = vpop.eup %3156  ;;  %v2106_v39 = vadd.f32 1e-05, %v2042_v41  ;;  %v1979_v53 = vmul.f32 0.0078125, %v1922_v0  ;;  %v4344_v23 = vmul.f32 0.0078125, %v1795_v19 }
 0x215   : > { %v2278_v57 = vmul.f32 %v4336_v49, %v2244_v4  ;;  %v2243_v31 = vadd.f32 %v4329_v25, %v2204_v11  ;;  %v2167_v12 = vmul.f32 %v3157_v27, %v2071_v45  ;;  %v3216_v45 = vld [vmem:[%s3569_s14] sm:$0xff] }
 0x216   : > { %3162 = vrsqrt.f32 %v2106_v39  ;;  %v2043_v62 = vsub.f32 %v1979_v53, %v2011_v16  ;;  %v2012_v44 = vmul.f32 %v4344_v23, %v4344_v23 }
 0x217   : > { %v2277_v8 = vmul.f32 %v4336_v49, %v2243_v31  ;;  %v2206_v52 = vmul.f32 %v4323_v54, %v2167_v12  ;;  %v1924_v24 = vpop.xlane.xlu1 %1923  ;;  %v1797_v28 = vpop.xlane.xlu0 %1796  ;;  %v2343_v26 = vrot.slane %v2278_v57, 7  ;;  %v3217_v57 = vld [vmem:[%s3569_s14 + $0x8] sm:$0xff] }
 0x218   : > { %v3159_v1 = vpop.eup %3158  ;;  %v2107_v6 = vadd.f32 1e-05, %v2043_v62  ;;  %v1980_v42 = vmul.f32 0.0078125, %v1924_v24  ;;  %v4358_v51 = vmul.f32 0.0078125, %v1797_v28 }
 0x219   : > { %v2342_v38 = vrot.slane %v2277_v8, 7  ;;  %v2245_v37 = vadd.f32 %v4329_v25, %v2206_v52  ;;  %v2168_v41 = vmul.f32 %v3159_v1, %v2072_v63  ;;  %v2074_v63 = vsub.f32 %v4056_v18, %v4317_v21 }
 0x21a   : > { %3164 = vrsqrt.f32 %v2107_v6  ;;  %v2044_v7 = vsub.f32 %v1980_v42, %v2012_v44  ;;  %v2013_v4 = vmul.f32 %v4358_v51, %v4358_v51 }
 0x21b   : > { %v2344_v11 = vsel %vm2341_vm2, %v2342_v38, %v2343_v26  ;;  %v2438_v0 = vadd.f32 %v3216_v45, %v2342_v38  ;;  %v2279_v19 = vmul.f32 %v4336_v49, %v2245_v37  ;;  %v2207_v27 = vmul.f32 %v4323_v54, %v2168_v41  ;;  %v1926_v39 = vpop.xlane.xlu0 %1925  ;;  %v1799_v16 = vpop.xlane.xlu1 %1798  ;;  %v3218_v41 = vld [vmem:[%s3569_s14 + $0x10] sm:$0xff] }
 0x21c   : > { %v3161_v53 = vpop.eup %3160  ;;  %v2439_v31 = vadd.f32 %v3217_v57, %v2344_v11  ;;  %v2108_v34 = vadd.f32 1e-05, %v2044_v7  ;;  %v1981_v3 = vmul.f32 0.0078125, %v1926_v39  ;;  %v4370_v12 = vmul.f32 0.0078125, %v1799_v16 }
 0x21d   : > { %2471 = vst [vmem:[%s4373_s19 - $0x1] sm:$0xfe] %v2438_v0  ;;  %v2345_v62 = vrot.slane %v2279_v19, 7  ;;  %v2246_v8 = vadd.f32 %v4329_v25, %v2207_v27  ;;  %v2169_v52 = vmul.f32 %v3161_v53, %v2073_v46  ;;  %v2075_v45 = vsub.f32 %v4073_v9, %v4333_v29 }
 0x21e   : > { %2472 = vst [vmem:[%s4373_s19 + $0x7] sm:$0xff] %v2439_v31  ;;  %3166 = vrsqrt.f32 %v2108_v34  ;;  %v2045_v24 = vsub.f32 %v1981_v3, %v2013_v4  ;;  %v2014_v44 = vmul.f32 %v4370_v12, %v4370_v12  ;;  %v3219_v34 = vld [vmem:[%s3569_s14 + $0x18] sm:$0xff] }
 0x21f   : > { %v2346_v28 = vsel %vm2341_vm2, %v2343_v26, %v2345_v62  ;;  %v2280_v1 = vmul.f32 %v4336_v49, %v2246_v8  ;;  %v2208_v6 = vmul.f32 %v4323_v54, %v2169_v52  ;;  %v1928_v42 = vpop.xlane.xlu1 %1927  ;;  %v1801_v38 = vpop.xlane.xlu0 %1800 }
 0x220   : > { %v3163_v37 = vpop.eup %3162  ;;  %v2440_v46 = vadd.f32 %v3218_v41, %v2346_v28  ;;  %v2109_v7 = vadd.f32 1e-05, %v2045_v24  ;;  %v1982_v11 = vmul.f32 0.0078125, %v1928_v42  ;;  %v4386_v18 = vmul.f32 0.0078125, %v1801_v38 }
 0x221   : > { %v2347_v21 = vrot.slane %v2280_v1, 7  ;;  %v2247_v26 = vadd.f32 %v4329_v25, %v2208_v6  ;;  %v2170_v4 = vmul.f32 %v3163_v37, %v2074_v63  ;;  %v2076_v24 = vsub.f32 %v4080_v5, %v4344_v23 }
 0x222   : > { %2473 = vst [vmem:[%s4373_s19 + $0xf] sm:$0xff] %v2440_v46  ;;  %3168 = vrsqrt.f32 %v2109_v7  ;;  %v2046_v0 = vsub.f32 %v1982_v11, %v2014_v44  ;;  %v2015_v16 = vmul.f32 %v4386_v18, %v4386_v18  ;;  %v3220_v46 = vld [vmem:[%s3569_s14 + $0x20] sm:$0xff] }
 0x223   : > { %v2348_v19 = vsel %vm2341_vm2, %v2345_v62, %v2347_v21  ;;  %v2281_v27 = vmul.f32 %v4336_v49, %v2247_v26  ;;  %v2209_v39 = vmul.f32 %v4323_v54, %v2170_v4  ;;  %v1930_v53 = vpop.xlane.xlu0 %1929  ;;  %v1803_v57 = vpop.xlane.xlu1 %1802 }
 0x224   : > { %v3165_v31 = vpop.eup %3164  ;;  %v2441_v3 = vadd.f32 %v3219_v34, %v2348_v19  ;;  %v2110_v8 = vadd.f32 1e-05, %v2046_v0  ;;  %v1983_v52 = vmul.f32 0.0078125, %v1930_v53  ;;  %v4398_v9 = vmul.f32 0.0078125, %v1803_v57  ;;  %v3221_v34 = vld [vmem:[%s3569_s14 + $0x28] sm:$0xff] }
 0x225   : > { %v2349_v29 = vrot.slane %v2281_v27, 7  ;;  %v2248_v62 = vadd.f32 %v4329_v25, %v2209_v39  ;;  %v2171_v63 = vmul.f32 %v3165_v31, %v2075_v45  ;;  %v2077_v45 = vsub.f32 %v4097_v59, %v4358_v51 }
 0x226   : > { %2474 = vst [vmem:[%s4373_s19 + $0x17] sm:$0xff] %v2441_v3  ;;  %3170 = vrsqrt.f32 %v2110_v8  ;;  %v2047_v28 = vsub.f32 %v1983_v52, %v2015_v16  ;;  %v2016_v42 = vmul.f32 %v4398_v9, %v4398_v9 }
 0x227   : > { %v2350_v1 = vsel %vm2341_vm2, %v2347_v21, %v2349_v29  ;;  %v2282_v6 = vmul.f32 %v4336_v49, %v2248_v62  ;;  %v2210_v44 = vmul.f32 %v4323_v54, %v2171_v63  ;;  %v1932_v38 = vpop.xlane.xlu1 %1931  ;;  %v1805_v37 = vpop.xlane.xlu0 %1804  ;;  %v2078_v63 = vsub.f32 %v4102_v35, %v4370_v12 }
 0x228   : > { %v3167_v41 = vpop.eup %3166  ;;  %v2442_v7 = vadd.f32 %v3220_v46, %v2350_v1  ;;  %v2111_v11 = vadd.f32 1e-05, %v2047_v28  ;;  %v1984_v26 = vmul.f32 0.0078125, %v1932_v38  ;;  %v4410_v5 = vmul.f32 0.0078125, %v1805_v37 }
 0x229   : > { %v2351_v23 = vrot.slane %v2282_v6, 7  ;;  %v2249_v21 = vadd.f32 %v4329_v25, %v2210_v44  ;;  %v2172_v4 = vmul.f32 %v3167_v41, %v2076_v24  ;;  %v3222_v41 = vld [vmem:[%s3569_s14 + $0x30] sm:$0xff] }
 0x22a   : > { %2475 = vst [vmem:[%s4373_s19 + $0x1f] sm:$0xff] %v2442_v7  ;;  %3172 = vrsqrt.f32 %v2111_v11  ;;  %v2048_v0 = vsub.f32 %v1984_v26, %v2016_v42  ;;  %v2017_v16 = vmul.f32 %v4410_v5, %v4410_v5 }
 0x22b   : > { %v2352_v19 = vsel %vm2341_vm2, %v2349_v29, %v2351_v23  ;;  %v2283_v27 = vmul.f32 %v4336_v49, %v2249_v21  ;;  %v2211_v39 = vmul.f32 %v4323_v54, %v2172_v4  ;;  %v1934_v53 = vpop.xlane.xlu0 %1933  ;;  %v1807_v57 = vpop.xlane.xlu1 %1806  ;;  %v2079_v21 = vsub.f32 %v4117_v13, %v4386_v18 }
 0x22c   : > { %v3169_v31 = vpop.eup %3168  ;;  %v2443_v3 = vadd.f32 %v3221_v34, %v2352_v19  ;;  %v2112_v8 = vadd.f32 1e-05, %v2048_v0  ;;  %v1985_v52 = vmul.f32 0.0078125, %v1934_v53  ;;  %v4422_v59 = vmul.f32 0.0078125, %v1807_v57  ;;  %v3223_v57 = vld [vmem:[%s3569_s14 + $0x38] sm:$0xff] }
 0x22d   : > { %v2353_v51 = vrot.slane %v2283_v27, 7  ;;  %v2250_v29 = vadd.f32 %v4329_v25, %v2211_v39  ;;  %v2173_v62 = vmul.f32 %v3169_v31, %v2077_v45 }
 0x22e   : > { %2476 = vst [vmem:[%s4373_s19 + $0x27] sm:$0xff] %v2443_v3  ;;  %3174 = vrsqrt.f32 %v2112_v8  ;;  %v2049_v24 = vsub.f32 %v1985_v52, %v2017_v16  ;;  %v2018_v44 = vmul.f32 %v4422_v59, %v4422_v59 }
 0x22f   : > { %v2354_v28 = vsel %vm2341_vm2, %v2351_v23, %v2353_v51  ;;  %v2284_v1 = vmul.f32 %v4336_v49, %v2250_v29  ;;  %v2212_v6 = vmul.f32 %v4323_v54, %v2173_v62  ;;  %v1936_v42 = vpop.xlane.xlu1 %1935  ;;  %v1809_v38 = vpop.xlane.xlu0 %1808 }
 0x230   : > { %v3171_v37 = vpop.eup %3170  ;;  %v2444_v46 = vadd.f32 %v3222_v41, %v2354_v28  ;;  %v2113_v7 = vadd.f32 1e-05, %v2049_v24  ;;  %v1986_v11 = vmul.f32 0.0078125, %v1936_v42  ;;  %v4434_v35 = vmul.f32 0.0078125, %v1809_v38  ;;  %v3224_v42 = vld [vmem:[%s3569_s14 + $0x40] sm:$0xff] }
 0x231   : > { %v2355_v12 = vrot.slane %v2284_v1, 7  ;;  %v2251_v26 = vadd.f32 %v4329_v25, %v2212_v6  ;;  %v2174_v23 = vmul.f32 %v3171_v37, %v2078_v63 }
 0x232   : > { %2477 = vst [vmem:[%s4373_s19 + $0x2f] sm:$0xff] %v2444_v46  ;;  %3176 = vrsqrt.f32 %v2113_v7  ;;  %v2050_v4 = vsub.f32 %v1986_v11, %v2018_v44  ;;  %v2019_v27 = vmul.f32 %v4434_v35, %v4434_v35  ;;  %v2081_v11 = vsub.f32 %v4137_v43, %v4410_v5 }
 0x233   : > { %v2356_v45 = vsel %vm2341_vm2, %v2353_v51, %v2355_v12  ;;  %v2285_v0 = vmul.f32 %v4336_v49, %v2251_v26  ;;  %v2213_v19 = vmul.f32 %v4323_v54, %v2174_v23  ;;  %v1938_v39 = vpop.xlane.xlu0 %1937  ;;  %v1811_v16 = vpop.xlane.xlu1 %1810  ;;  %v2080_v51 = vsub.f32 %v4122_v50, %v4398_v9 }
 0x234   : > { %v3173_v53 = vpop.eup %3172  ;;  %v2445_v31 = vadd.f32 %v3223_v57, %v2356_v45  ;;  %v2114_v34 = vadd.f32 1e-05, %v2050_v4  ;;  %v1987_v3 = vmul.f32 0.0078125, %v1938_v39  ;;  %v4446_v13 = vmul.f32 0.0078125, %v1811_v16 }
 0x235   : > { %v2357_v18 = vrot.slane %v2285_v0, 7  ;;  %v2252_v8 = vadd.f32 %v4329_v25, %v2213_v19  ;;  %v2175_v52 = vmul.f32 %v3173_v53, %v2079_v21 }
 0x236   : > { %2478 = vst [vmem:[%s4373_s19 + $0x37] sm:$0xff] %v2445_v31  ;;  %3178 = vrsqrt.f32 %v2114_v34  ;;  %v2051_v29 = vsub.f32 %v1987_v3, %v2019_v27  ;;  %v2020_v28 = vmul.f32 %v4446_v13, %v4446_v13  ;;  %v3225_v27 = vld [vmem:[%s3569_s14 + $0x48] sm:$0xff]  ;;  %v2082_v34 = vsub.f32 %v4142_v22, %v4422_v59 }
 0x237   : > { %v2358_v62 = vsel %vm2341_vm2, %v2355_v12, %v2357_v18  ;;  %v2286_v63 = vmul.f32 %v4336_v49, %v2252_v8  ;;  %v2214_v24 = vmul.f32 %v4323_v54, %v2175_v52  ;;  %v1940_v1 = vpop.xlane.xlu1 %1939 }
 0x238   : > { %v1813_v6 = vpop.xlane.xlu0 %1812  ;;  %v3175_v44 = vpop.eup %3174  ;;  %v2446_v38 = vadd.f32 %v3224_v42, %v2358_v62  ;;  %v2115_v37 = vadd.f32 1e-05, %v2051_v29  ;;  %v1988_v41 = vmul.f32 0.0078125, %v1940_v1 }
 0x239   : > { %v4458_v50 = vmul.f32 0.0078125, %v1813_v6  ;;  %v2359_v9 = vrot.slane %v2286_v63, 7  ;;  %v2253_v46 = vadd.f32 %v4329_v25, %v2214_v24  ;;  %v2176_v7 = vmul.f32 %v3175_v44, %v2080_v51  ;;  %v3226_v24 = vld [vmem:[%s3569_s14 + $0x50] sm:$0xff] }
 0x23a   : > { %2479 = vst [vmem:[%s4373_s19 + $0x3f] sm:$0xff] %v2446_v38  ;;  %3180 = vrsqrt.f32 %v2115_v37  ;;  %v2052_v12 = vsub.f32 %v1988_v41, %v2020_v28  ;;  %v2083_v38 = vsub.f32 %v4157_v58, %v4434_v35 }
 0x23b   : > { %v2360_v26 = vsel %vm2341_vm2, %v2357_v18, %v2359_v9  ;;  %v2287_v23 = vmul.f32 %v4336_v49, %v2253_v46  ;;  %v2215_v21 = vmul.f32 %v4323_v54, %v2176_v7  ;;  %v2021_v4 = vmul.f32 %v4458_v50, %v4458_v50  ;;  %v1815_v0 = vpop.xlane.xlu1 %1814 }
 0x23c   : > { %v1942_v45 = vpop.xlane.xlu0 %1941  ;;  %v3177_v19 = vpop.eup %3176  ;;  %v2447_v39 = vadd.f32 %v3225_v27, %v2360_v26  ;;  %v2116_v16 = vadd.f32 1e-05, %v2052_v12  ;;  %v4470_v43 = vmul.f32 0.0078125, %v1815_v0  ;;  %v2084_v27 = vsub.f32 %v4162_v20, %v4446_v13 }
 0x23d   : > { %v1989_v53 = vmul.f32 0.0078125, %v1942_v45  ;;  %v2361_v5 = vrot.slane %v2287_v23, 7  ;;  %v2254_v57 = vadd.f32 %v4329_v25, %v2215_v21  ;;  %v2177_v31 = vmul.f32 %v3177_v19, %v2081_v11  ;;  %v3227_v23 = vld [vmem:[%s3569_s14 + $0x58] sm:$0xff] }
 0x23e   : > { %2480 = vst [vmem:[%s4373_s19 + $0x47] sm:$0xff] %v2447_v39  ;;  %3182 = vrsqrt.f32 %v2116_v16  ;;  %v2022_v51 = vmul.f32 %v4470_v43, %v4470_v43 }
 0x23f   : > { %v2053_v3 = vsub.f32 %v1989_v53, %v2021_v4  ;;  %v2362_v18 = vsel %vm2341_vm2, %v2359_v9, %v2361_v5  ;;  %v2288_v8 = vmul.f32 %v4336_v49, %v2254_v57  ;;  %v2216_v52 = vmul.f32 %v4323_v54, %v2177_v31  ;;  %v1944_v29 = vpop.xlane.xlu1 %1943 }
 0x240   : > { %v1817_v62 = vpop.xlane.xlu0 %1816  ;;  %v3179_v63 = vpop.eup %3178  ;;  %v2448_v28 = vadd.f32 %v3226_v24, %v2362_v18  ;;  %v1990_v6 = vmul.f32 0.0078125, %v1944_v29  ;;  %v3228_v18 = vld [vmem:[%s3569_s14 + $0x60] sm:$0xff] }
 0x241   : > { %v2117_v1 = vadd.f32 1e-05, %v2053_v3  ;;  %v4482_v22 = vmul.f32 0.0078125, %v1817_v62  ;;  %v2363_v59 = vrot.slane %v2288_v8, 7  ;;  %v2255_v44 = vadd.f32 %v4329_v25, %v2216_v52 }
 0x242   : > { %v2178_v42 = vmul.f32 %v3179_v63, %v2082_v34  ;;  %2481 = vst [vmem:[%s4373_s19 + $0x4f] sm:$0xff] %v2448_v28  ;;  %v2054_v37 = vsub.f32 %v1990_v6, %v2022_v51  ;;  %v2085_v63 = vsub.f32 %v4177_v61, %v4458_v50 }
 0x243   : > { %3184 = vrsqrt.f32 %v2117_v1  ;;  %v2364_v41 = vsel %vm2341_vm2, %v2361_v5, %v2363_v59  ;;  %v2289_v9 = vmul.f32 %v4336_v49, %v2255_v44  ;;  %v2023_v7 = vmul.f32 %v4482_v22, %v4482_v22  ;;  %v1819_v12 = vpop.xlane.xlu1 %1818 }
 0x244   : > { %v2217_v46 = vmul.f32 %v4323_v54, %v2178_v42  ;;  %v1946_v11 = vpop.xlane.xlu0 %1945  ;;  %v3181_v26 = vpop.eup %3180  ;;  %v2449_v21 = vadd.f32 %v3227_v23, %v2364_v41  ;;  %v2118_v4 = vadd.f32 1e-05, %v2054_v37  ;;  %v4494_v58 = vmul.f32 0.0078125, %v1819_v12  ;;  %v3229_v37 = vld [vmem:[%s3569_s14 + $0x68] sm:$0xff] }
 0x245   : > { %v1991_v45 = vmul.f32 0.0078125, %v1946_v11  ;;  %v2365_v35 = vrot.slane %v2289_v9, 7  ;;  %v2179_v19 = vmul.f32 %v3181_v26, %v2083_v38  ;;  %v2086_v12 = vsub.f32 %v4182_v10, %v4470_v43 }
 0x246   : > { %v2256_v0 = vadd.f32 %v4329_v25, %v2217_v46  ;;  %2482 = vst [vmem:[%s4373_s19 + $0x57] sm:$0xff] %v2449_v21  ;;  %3186 = vrsqrt.f32 %v2118_v4  ;;  %v2024_v57 = vmul.f32 %v4494_v58, %v4494_v58 }
 0x247   : > { %v2055_v39 = vsub.f32 %v1991_v45, %v2023_v7  ;;  %v2366_v16 = vsel %vm2341_vm2, %v2363_v59, %v2365_v35  ;;  %v2218_v5 = vmul.f32 %v4323_v54, %v2179_v19  ;;  %v1948_v31 = vpop.xlane.xlu1 %1947 }
 0x248   : > { %v2290_v53 = vmul.f32 %v4336_v49, %v2256_v0  ;;  %v1821_v34 = vpop.xlane.xlu0 %1820  ;;  %v3183_v3 = vpop.eup %3182  ;;  %v2450_v8 = vadd.f32 %v3228_v18, %v2366_v16  ;;  %v1992_v51 = vmul.f32 0.0078125, %v1948_v31  ;;  %v2087_v31 = vsub.f32 %v4197_v40, %v4482_v22 }
 0x249   : > { %v2119_v52 = vadd.f32 1e-05, %v2055_v39  ;;  %v4506_v20 = vmul.f32 0.0078125, %v1821_v34  ;;  %v2257_v29 = vadd.f32 %v4329_v25, %v2218_v5  ;;  %v2180_v62 = vmul.f32 %v3183_v3, %v2084_v27  ;;  %v3230_v27 = vld [vmem:[%s3569_s14 + $0x70] sm:$0xff] }
 0x24a   : > { %v2367_v13 = vrot.slane %v2290_v53, 7  ;;  %2483 = vst [vmem:[%s4373_s19 + $0x5f] sm:$0xff] %v2450_v8  ;;  %v2056_v24 = vsub.f32 %v1992_v51, %v2024_v57 }
 0x24b   : > { %3188 = vrsqrt.f32 %v2119_v52  ;;  %v2291_v1 = vmul.f32 %v4336_v49, %v2257_v29  ;;  %v2219_v6 = vmul.f32 %v4323_v54, %v2180_v62  ;;  %v2025_v59 = vmul.f32 %v4506_v20, %v4506_v20  ;;  %v1823_v42 = vpop.xlane.xlu1 %1822  ;;  %v3231_v62 = vld [vmem:[%s3569_s14 + $0x78] sm:$0xff] }
 0x24c   : > { %v2368_v28 = vsel %vm2341_vm2, %v2365_v35, %v2367_v13  ;;  %v1950_v44 = vpop.xlane.xlu0 %1949  ;;  %v2120_v9 = vadd.f32 1e-05, %v2056_v24  ;;  %v4518_v61 = vmul.f32 0.0078125, %v1823_v42 }
 0x24d   : > { %v3185_v38 = vpop.eup %3184  ;;  %v2451_v41 = vadd.f32 %v3229_v37, %v2368_v28  ;;  %v1993_v46 = vmul.f32 0.0078125, %v1950_v44  ;;  %v2369_v50 = vrot.slane %v2291_v1, 7  ;;  %v2258_v7 = vadd.f32 %v4329_v25, %v2219_v6 }
 0x24e   : > { %v2181_v11 = vmul.f32 %v3185_v38, %v2085_v63  ;;  %3190 = vrsqrt.f32 %v2120_v9  ;;  %v2026_v45 = vmul.f32 %v4518_v61, %v4518_v61 }
 0x24f   : > { %2484 = vst [vmem:[%s4373_s19 + $0x67] sm:$0xff] %v2451_v41  ;;  %v2057_v26 = vsub.f32 %v1993_v46, %v2025_v59  ;;  %v2370_v23 = vsel %vm2341_vm2, %v2367_v13, %v2369_v50  ;;  %v2292_v21 = vmul.f32 %v4336_v49, %v2258_v7  ;;  %v1952_v35 = vpop.xlane.xlu1 %1951  ;;  %v2088_v59 = vsub.f32 %v4202_v47, %v4494_v58  ;;  %v3232_v7 = vld [vmem:[%s3569_s14 + $0x80] sm:$0xff] }
 0x250   : > { %v2220_v4 = vmul.f32 %v4323_v54, %v2181_v11  ;;  %v1825_v0 = vpop.xlane.xlu0 %1824  ;;  %v3187_v19 = vpop.eup %3186  ;;  %v2452_v39 = vadd.f32 %v3230_v27, %v2370_v23  ;;  %v1994_v53 = vmul.f32 0.0078125, %v1952_v35 }
 0x251   : > { %v2121_v16 = vadd.f32 1e-05, %v2057_v26  ;;  %v4530_v10 = vmul.f32 0.0078125, %v1825_v0  ;;  %v2371_v43 = vrot.slane %v2292_v21, 7  ;;  %v2182_v57 = vmul.f32 %v3187_v19, %v2086_v12 }
 0x252   : > { %v2259_v5 = vadd.f32 %v4329_v25, %v2220_v4  ;;  %2485 = vst [vmem:[%s4373_s19 + $0x6f] sm:$0xff] %v2452_v39  ;;  %v2058_v34 = vsub.f32 %v1994_v53, %v2026_v45  ;;  %v2089_v4 = vsub.f32 %v4217_v48, %v4506_v20 }
 0x253   : > { %3192 = vrsqrt.f32 %v2121_v16  ;;  %v2372_v3 = vsel %vm2341_vm2, %v2369_v50, %v2371_v43  ;;  %v2221_v8 = vmul.f32 %v4323_v54, %v2182_v57  ;;  %v2027_v52 = vmul.f32 %v4530_v10, %v4530_v10  ;;  %v1827_v13 = vpop.xlane.xlu1 %1826 }
 0x254   : > { %v2293_v18 = vmul.f32 %v4336_v49, %v2259_v5  ;;  %v1954_v51 = vpop.xlane.xlu0 %1953  ;;  %v2453_v63 = vadd.f32 %v3231_v62, %v2372_v3  ;;  %v2122_v24 = vadd.f32 1e-05, %v2058_v34  ;;  %v4542_v40 = vmul.f32 0.0078125, %v1827_v13 }
 0x255   : > { %v3189_v29 = vpop.eup %3188  ;;  %v1995_v28 = vmul.f32 0.0078125, %v1954_v51  ;;  %v2260_v1 = vadd.f32 %v4329_v25, %v2221_v8 }
 0x256   : > { %v2373_v22 = vrot.slane %v2293_v18, 7  ;;  %v2183_v6 = vmul.f32 %v3189_v29, %v2087_v31  ;;  %2486 = vst [vmem:[%s4373_s19 + $0x77] sm:$0xff] %v2453_v63  ;;  %3194 = vrsqrt.f32 %v2122_v24  ;;  %v2028_v41 = vmul.f32 %v4542_v40, %v4542_v40 }
 0x257   : > { %v2059_v44 = vsub.f32 %v1995_v28, %v2027_v52  ;;  %v2294_v38 = vmul.f32 %v4336_v49, %v2260_v1  ;;  %v1956_v9 = vpop.xlane.xlu1 %1955  ;;  %v2090_v18 = vsub.f32 %v4222_v33, %v4518_v61  ;;  %v3234_v28 = vld [vmem:[%s3569_s14 + $0x90] sm:$0xff] }
 0x258   : > { %v2374_v42 = vsel %vm2341_vm2, %v2371_v43, %v2373_v22  ;;  %v2222_v37 = vmul.f32 %v4323_v54, %v2183_v6  ;;  %v1829_v46 = vpop.xlane.xlu0 %1828  ;;  %v3191_v50 = vpop.eup %3190  ;;  %v1996_v26 = vmul.f32 0.0078125, %v1956_v9  ;;  %v3233_v43 = vld [vmem:[%s3569_s14 + $0x88] sm:$0xff] }
 0x259   : > { %v2454_v11 = vadd.f32 %v3232_v7, %v2374_v42  ;;  %v2123_v12 = vadd.f32 1e-05, %v2059_v44  ;;  %v4554_v47 = vmul.f32 0.0078125, %v1829_v46  ;;  %v2375_v58 = vrot.slane %v2294_v38, 7 }
 0x25a   : > { %v2261_v23 = vadd.f32 %v4329_v25, %v2222_v37  ;;  %v2184_v21 = vmul.f32 %v3191_v50, %v2088_v59  ;;  %v2060_v45 = vsub.f32 %v1996_v26, %v2028_v41  ;;  %v2091_v42 = vsub.f32 %v4237_v17, %v4530_v10 }
 0x25b   : > { %2487 = vst [vmem:[%s4373_s19 + $0x7f] sm:$0xff] %v2454_v11  ;;  %3196 = vrsqrt.f32 %v2123_v12  ;;  %v2376_v35 = vsel %vm2341_vm2, %v2373_v22, %v2375_v58  ;;  %v2029_v27 = vmul.f32 %v4554_v47, %v4554_v47  ;;  %v1831_v16 = vpop.xlane.xlu1 %1830  ;;  %v3235_v12 = vld [vmem:[%s3569_s14 + $0x98] sm:$0xff] }
 0x25c   : > { %v2295_v0 = vmul.f32 %v4336_v49, %v2261_v23  ;;  %v2223_v19 = vmul.f32 %v4323_v54, %v2184_v21  ;;  %v1958_v39 = vpop.xlane.xlu0 %1957  ;;  %v2455_v5 = vadd.f32 %v3233_v43, %v2376_v35  ;;  %v2124_v57 = vadd.f32 1e-05, %v2060_v45 }
 0x25d   : > { %v3193_v53 = vpop.eup %3192  ;;  %v1997_v31 = vmul.f32 0.0078125, %v1958_v39  ;;  %v4566_v48 = vmul.f32 0.0078125, %v1831_v16  ;;  %v2092_v45 = vsub.f32 %v4242_v32, %v4542_v40 }
 0x25e   : > { %v2377_v20 = vrot.slane %v2295_v0, 7  ;;  %v2262_v34 = vadd.f32 %v4329_v25, %v2223_v19  ;;  %v2185_v3 = vmul.f32 %v3193_v53, %v2089_v4  ;;  %2488 = vst [vmem:[%s4373_s19 + $0x87] sm:$0xff] %v2455_v5  ;;  %3198 = vrsqrt.f32 %v2124_v57  ;;  %v3236_v5 = vld [vmem:[%s3569_s14 + $0xa0] sm:$0xff] }
 0x25f   : > { %v2061_v8 = vsub.f32 %v1997_v31, %v2029_v27  ;;  %v2030_v29 = vmul.f32 %v4566_v48, %v4566_v48  ;;  %v1960_v62 = vpop.xlane.xlu1 %1959 }
 0x260   : > { %v2378_v52 = vsel %vm2341_vm2, %v2375_v58, %v2377_v20  ;;  %v2296_v51 = vmul.f32 %v4336_v49, %v2262_v34  ;;  %v2224_v13 = vmul.f32 %v4323_v54, %v2185_v3  ;;  %v1833_v63 = vpop.xlane.xlu0 %1832  ;;  %v3195_v24 = vpop.eup %3194  ;;  %v1998_v6 = vmul.f32 0.0078125, %v1960_v62 }
 0x261   : > { %v2456_v22 = vadd.f32 %v3234_v28, %v2378_v52  ;;  %v2125_v1 = vadd.f32 1e-05, %v2061_v8  ;;  %v4578_v33 = vmul.f32 0.0078125, %v1833_v63  ;;  %v2186_v44 = vmul.f32 %v3195_v24, %v2090_v18  ;;  %v3237_v28 = vld [vmem:[%s3569_s14 + $0xa8] sm:$0xff] }
 0x262   : > { %v2379_v61 = vrot.slane %v2296_v51, 7  ;;  %v2263_v59 = vadd.f32 %v4329_v25, %v2224_v13  ;;  %v2062_v38 = vsub.f32 %v1998_v6, %v2030_v29  ;;  %v2093_v18 = vsub.f32 %v4257_v56, %v4554_v47 }
 0x263   : > { %2489 = vst [vmem:[%s4373_s19 + $0x8f] sm:$0xff] %v2456_v22  ;;  %3200 = vrsqrt.f32 %v2125_v1  ;;  %v2225_v9 = vmul.f32 %v4323_v54, %v2186_v44  ;;  %v2031_v46 = vmul.f32 %v4578_v33, %v4578_v33  ;;  %v1835_v7 = vpop.xlane.xlu1 %1834  ;;  %v2094_v44 = vsub.f32 %v4260_v15, %v4566_v48 }
 0x264   : > { %v2380_v37 = vsel %vm2341_vm2, %v2377_v20, %v2379_v61  ;;  %v2297_v41 = vmul.f32 %v4336_v49, %v2263_v59  ;;  %v1962_v50 = vpop.xlane.xlu0 %1961  ;;  %v2126_v58 = vadd.f32 1e-05, %v2062_v38  ;;  %v4590_v17 = vmul.f32 0.0078125, %v1835_v7 }
 0x265   : > { %v3197_v11 = vpop.eup %3196  ;;  %v2457_v26 = vadd.f32 %v3235_v12, %v2380_v37  ;;  %v1999_v23 = vmul.f32 0.0078125, %v1962_v50  ;;  %v2264_v21 = vadd.f32 %v4329_v25, %v2225_v9 }
 0x266   : > { %v2381_v10 = vrot.slane %v2297_v41, 7  ;;  %v2187_v4 = vmul.f32 %v3197_v11, %v2091_v42  ;;  %3202 = vrsqrt.f32 %v2126_v58  ;;  %v2032_v39 = vmul.f32 %v4590_v17, %v4590_v17  ;;  %v3238_v11 = vld [vmem:[%s3569_s14 + $0xb0] sm:$0xff] }
 0x267   : > { %2490 = vst [vmem:[%s4373_s19 + $0x97] sm:$0xff] %v2457_v26  ;;  %v2063_v35 = vsub.f32 %v1999_v23, %v2031_v46  ;;  %v2298_v19 = vmul.f32 %v4336_v49, %v2264_v21  ;;  %v1964_v16 = vpop.xlane.xlu1 %1963  ;;  %v2095_v21 = vsub.f32 %v4271_v55, %v4578_v33 }
 0x268   : > { %v2382_v0 = vsel %vm2341_vm2, %v2379_v61, %v2381_v10  ;;  %v2226_v27 = vmul.f32 %v4323_v54, %v2187_v4  ;;  %v3199_v43 = vpop.eup %3198  ;;  %v2000_v20 = vmul.f32 0.0078125, %v1964_v16 }
 0x269   : > { %v1837_v53 = vpop.xlane.xlu0 %1836  ;;  %v2458_v57 = vadd.f32 %v3236_v5, %v2382_v0  ;;  %v2127_v31 = vadd.f32 1e-05, %v2063_v35  ;;  %v2383_v40 = vrot.slane %v2298_v19, 7  ;;  %v2188_v3 = vmul.f32 %v3199_v43, %v2092_v45 }
 0x26a   : > { %v4602_v32 = vmul.f32 0.0078125, %v1837_v53  ;;  %v2265_v34 = vadd.f32 %v4329_v25, %v2226_v27  ;;  %v2064_v8 = vsub.f32 %v2000_v20, %v2032_v39  ;;  %v3239_v53 = vld [vmem:[%s3569_s14 + $0xb8] sm:$0xff] }
 0x26b   : > { %2491 = vst [vmem:[%s4373_s19 + $0x9f] sm:$0xff] %v2458_v57  ;;  %3204 = vrsqrt.f32 %v2127_v31  ;;  %v2384_v52 = vsel %vm2341_vm2, %v2381_v10, %v2383_v40  ;;  %v2227_v13 = vmul.f32 %v4323_v54, %v2188_v3  ;;  %v1839_v63 = vpop.xlane.xlu1 %1838 }
 0x26c   : > { %v2299_v51 = vmul.f32 %v4336_v49, %v2265_v34  ;;  %v2033_v29 = vmul.f32 %v4602_v32, %v4602_v32  ;;  %v2459_v22 = vadd.f32 %v3237_v28, %v2384_v52  ;;  %v2128_v1 = vadd.f32 1e-05, %v2064_v8 }
 0x26d   : > { %v1966_v62 = vpop.xlane.xlu0 %1965  ;;  %v3201_v24 = vpop.eup %3200  ;;  %v4614_v56 = vmul.f32 0.0078125, %v1839_v63  ;;  %v2266_v61 = vadd.f32 %v4329_v25, %v2227_v13  ;;  %v2096_v8 = vsub.f32 %v4274_v30, %v4590_v17  ;;  %v3240_v13 = vld [vmem:[%s3569_s14 + $0xc0] sm:$0xff] }
 0x26e   : > { %v2001_v6 = vmul.f32 0.0078125, %v1966_v62  ;;  %v2385_v47 = vrot.slane %v2299_v51, 7  ;;  %v2189_v59 = vmul.f32 %v3201_v24, %v2093_v18  ;;  %2492 = vst [vmem:[%s4373_s19 + $0xa7] sm:$0xff] %v2459_v22  ;;  %3206 = vrsqrt.f32 %v2128_v1 }
 0x26f   : > { %v2300_v37 = vmul.f32 %v4336_v49, %v2266_v61  ;;  %v2034_v9 = vmul.f32 %v4614_v56, %v4614_v56  ;;  %v1968_v46 = vpop.xlane.xlu1 %1967  ;;  %v2097_v61 = vsub.f32 %v4285_v36, %v4602_v32  ;;  %v2098_v36 = vsub.f32 %v4288_v2, %v4614_v56  ;;  %v3243_v56 = vld [vmem:[%s3569_s14 + $0xd8] sm:$0xff] }
 0x270   : > { %v2065_v42 = vsub.f32 %v2001_v6, %v2033_v29  ;;  %v2386_v38 = vsel %vm2341_vm2, %v2383_v40, %v2385_v47  ;;  %v2228_v41 = vmul.f32 %v4323_v54, %v2189_v59  ;;  %v3203_v7 = vpop.eup %3202  ;;  %v2002_v58 = vmul.f32 0.0078125, %v1968_v46 }
 0x271   : > { %v1841_v50 = vpop.xlane.xlu0 %1840  ;;  %v2460_v12 = vadd.f32 %v3238_v11, %v2386_v38  ;;  %v2387_v48 = vrot.slane %v2300_v37, 7  ;;  %v2190_v10 = vmul.f32 %v3203_v7, %v2094_v44  ;;  %v3241_v44 = vld [vmem:[%s3569_s14 + $0xc8] sm:$0xff]  ;;  %v3242_v11 = vld [vmem:[%s3569_s14 + $0xd0] sm:$0xff] }
 0x272   : > { %v2129_v26 = vadd.f32 1e-05, %v2065_v42  ;;  %v4626_v15 = vmul.f32 0.0078125, %v1841_v50  ;;  %v2267_v23 = vadd.f32 %v4329_v25, %v2228_v41  ;;  %v2066_v4 = vsub.f32 %v2002_v58, %v2034_v9 }
 0x273   : > { %2493 = vst [vmem:[%s4373_s19 + $0xaf] sm:$0xff] %v2460_v12  ;;  %v2388_v45 = vsel %vm2341_vm2, %v2385_v47, %v2387_v48  ;;  %v2229_v0 = vmul.f32 %v4323_v54, %v2190_v10  ;;  %v1843_v39 = vpop.xlane.xlu1 %1842 }
 0x274   : > { %3208 = vrsqrt.f32 %v2129_v26  ;;  %v2301_v35 = vmul.f32 %v4336_v49, %v2267_v23  ;;  %v2035_v19 = vmul.f32 %v4626_v15, %v4626_v15  ;;  %v2461_v43 = vadd.f32 %v3239_v53, %v2388_v45  ;;  %v3245_v53 = vld [vmem:[%s3569_s14 + $0xe0] sm:$0xff] }
 0x275   : > { %v1970_v27 = vpop.xlane.xlu0 %1969  ;;  %v3205_v16 = vpop.eup %3204  ;;  %v2130_v5 = vadd.f32 1e-05, %v2066_v4  ;;  %v4638_v33 = vmul.f32 0.0078125, %v1843_v39  ;;  %v2268_v31 = vadd.f32 %v4329_v25, %v2229_v0  ;;  %v2099_v4 = vsub.f32 %v4299_v14, %v4626_v15 }
 0x276   : > { %v2003_v55 = vmul.f32 0.0078125, %v1970_v27  ;;  %v2389_v57 = vrot.slane %v2301_v35, 7  ;;  %v2191_v20 = vmul.f32 %v3205_v16, %v2095_v21  ;;  %2494 = vst [vmem:[%s4373_s19 + $0xb7] sm:$0xff] %v2461_v43 }
 0x277   : > { %3210 = vrsqrt.f32 %v2130_v5  ;;  %v2302_v3 = vmul.f32 %v4336_v49, %v2268_v31  ;;  %v1972_v52 = vpop.xlane.xlu1 %1971  ;;  %v2036_v63 = vmul.f32 %v4638_v33, %v4638_v33  ;;  %v2100_v15 = vsub.f32 %v4302_v60, %v4638_v33  ;;  %v3246_v5 = vld [vmem:[%s4769_s4] ss:$0 sm:$0xff] }
 0x278   : > { %v2067_v40 = vsub.f32 %v2003_v55, %v2035_v19  ;;  %v2390_v34 = vsel %vm2341_vm2, %v2387_v48, %v2389_v57  ;;  %v2230_v18 = vmul.f32 %v4323_v54, %v2191_v20  ;;  %v3207_v51 = vpop.eup %3206  ;;  %v2004_v24 = vmul.f32 0.0078125, %v1972_v52  ;;  %v3247_v20 = vld [vmem:[%s3569_s14 + $0xe8] sm:$0xff]  ;;  %v3248_v52 = vld [vmem:[%s3569_s14 + $0xf0] sm:$0xff] }
 0x279   : > { %v2462_v29 = vadd.f32 %v3240_v13, %v2390_v34  ;;  %v2391_v28 = vrot.slane %v2302_v3, 7  ;;  %v2192_v1 = vmul.f32 %v3207_v51, %v2096_v8 }
 0x27a   : > { %v2131_v62 = vadd.f32 1e-05, %v2067_v40  ;;  %v2269_v22 = vadd.f32 %v4329_v25, %v2230_v18  ;;  %v2068_v6 = vsub.f32 %v2004_v24, %v2036_v63 }
 0x27b   : > { %2495 = vst [vmem:[%s4373_s19 + $0xbf] sm:$0xff] %v2462_v29  ;;  %v2392_v30 = vsel %vm2341_vm2, %v2389_v57, %v2391_v28  ;;  %v2231_v47 = vmul.f32 %v4323_v54, %v2192_v1 }
 0x27c   : > { %3212 = vrsqrt.f32 %v2131_v62  ;;  %v2303_v17 = vmul.f32 %v4336_v49, %v2269_v22  ;;  %v2463_v42 = vadd.f32 %v3241_v44, %v2392_v30  ;;  %v2132_v38 = vadd.f32 1e-05, %v2068_v6  ;;  %v3249_v62 = vld [vmem:[%s3569_s14 + $0x100] sm:$0x3] }
 0x27d   : > { %v2270_v41 = vadd.f32 %v4329_v25, %v2231_v47 }
 0x27e   : > { %v3209_v59 = vpop.eup %3208  ;;  %v2393_v37 = vrot.slane %v2303_v17, 7  ;;  %2496 = vst [vmem:[%s4373_s19 + $0xc7] sm:$0xff] %v2463_v42  ;;  %3214 = vrsqrt.f32 %v2132_v38 }
 0x27f   : > { %v2193_v9 = vmul.f32 %v3209_v59, %v2097_v61  ;;  %v2304_v50 = vmul.f32 %v4336_v49, %v2270_v41 }
 0x280   : > { %v2394_v46 = vsel %vm2341_vm2, %v2391_v28, %v2393_v37 }
 0x281   : > { %v2232_v7 = vmul.f32 %v4323_v54, %v2193_v9  ;;  %v3211_v32 = vpop.eup %3210  ;;  %v2464_v12 = vadd.f32 %v3242_v11, %v2394_v46  ;;  %v2395_v26 = vrot.slane %v2304_v50, 7 }
 0x282   : > { %v2194_v48 = vmul.f32 %v3211_v32, %v2098_v36 }
 0x283   : > { %v2271_v58 = vadd.f32 %v4329_v25, %v2232_v7  ;;  %2497 = vst [vmem:[%s4373_s19 + $0xcf] sm:$0xff] %v2464_v12  ;;  %v2396_v23 = vsel %vm2341_vm2, %v2393_v37, %v2395_v26 }
 0x284   : > { %v2233_v21 = vmul.f32 %v4323_v54, %v2194_v48  ;;  %v2465_v45 = vadd.f32 %v3243_v56, %v2396_v23  ;;  %v3244_v54 = vld [vmem:[%s4768_s3] ss:$0 sm:$0xff] }
 0x285   : > { %v2305_v10 = vmul.f32 %v4336_v49, %v2271_v58 }
 0x286   : > { %v3213_v2 = vpop.eup %3212  ;;  %v2272_v0 = vadd.f32 %v4329_v25, %v2233_v21  ;;  %2498 = vst [vmem:[%s4373_s19 + $0xd7] sm:$0xff] %v2465_v45 }
 0x287   : > { %v2397_v35 = vrot.slane %v2305_v10, 7  ;;  %v2195_v19 = vmul.f32 %v3213_v2, %v2099_v4 }
 0x288   : > { %v2306_v39 = vmul.f32 %v4336_v49, %v2272_v0  ;;  %v3215_v16 = vpop.eup %3214 }
 0x289   : > { %v2398_v27 = vsel %vm2341_vm2, %v2395_v26, %v2397_v35  ;;  %v2234_v14 = vmul.f32 %v3244_v54, %v2195_v19  ;;  %v2196_v57 = vmul.f32 %v3215_v16, %v2100_v15 }
 0x28a   : > { %v2466_v25 = vadd.f32 %v3245_v53, %v2398_v27  ;;  %v2399_v43 = vrot.slane %v2306_v39, 7 }
 0x28b   : > { %v2273_v55 = vadd.f32 %v3246_v5, %v2234_v14  ;;  %v2235_v33 = vmul.f32 %v3244_v54, %v2196_v57 }
 0x28c   : > { %2499 = vst [vmem:[%s4373_s19 + $0xdf] sm:$0xff] %v2466_v25  ;;  %v2400_v31 = vsel %vm2341_vm2, %v2397_v35, %v2399_v43 }
 0x28d   : > { %v2307_v60 = vmul.f32 %v4336_v49, %v2273_v55  ;;  %v2467_v40 = vadd.f32 %v3247_v20, %v2400_v31  ;;  %v2274_v3 = vadd.f32 %v3246_v5, %v2235_v33 }
 0x28f   : > { %v2401_v34 = vrot.slane %v2307_v60, 7  ;;  %2500 = vst [vmem:[%s4373_s19 + $0xe7] sm:$0xff] %v2467_v40  ;;  %v2308_v8 = vmul.f32 %v4336_v49, %v2274_v3  ;;  %v3250_v49 = vld [vmem:[%s3569_s14 + $0xf8] sm:$0xff] }
 0x291   : > { %v2402_v18 = vsel %vm2341_vm2, %v2399_v43, %v2401_v34  ;;  %v2403_v13 = vrot.slane %v2308_v8, 7 }
 0x292   : > { %v2468_v51 = vadd.f32 %v3248_v52, %v2402_v18 }
 0x293   : > { %v2404_v29 = vsel %vm2341_vm2, %v2401_v34, %v2403_v13  ;;  %v2470_v63 = vadd.f32 %v3249_v62, %v2403_v13 }
 0x294   : > { %2501 = vst [vmem:[%s4373_s19 + $0xef] sm:$0xff] %v2468_v51  ;;  %v2469_v24 = vadd.f32 %v3250_v49, %v2404_v29 }
 0x295   : > { %2503 = vst [vmem:[%s4373_s19 + $0xff] sm:$0x1] %v2470_v63 }
 0x296   : > { %2502 = vst [vmem:[%s4373_s19 + $0xf7] sm:$0xff] %v2469_v24 }
 0x297   : > { %3264 = shalt.err (!%p3261_p7)
}
 0x298   : > { %s3265_s14 = scalar_lea.hbm %s4704_s20, 4096  ;;  %s3269_s17 = scalar_lea.hbm %s4771_s6, 32768 }
 0x299   : > { %p3266_p9 = scmp.ne.s32.totalorder %s4704_s20, %s3265_s14  ;;  %p3270_p12 = scmp.lt.u32.totalorder %s4704_s20, %s4771_s6 }
 0x29a   : > { %p3271_p13 = scmp.lt.u32.totalorder %s3269_s17, %s3265_s14  ;;  %p3273_p1 = scmp.lt.u32.totalorder %s3265_s14, %s4704_s20 }
 0x29b   : > { %p3267_p10 = pnand %p3266_p9, %p3440_p3 }
 0x29c   : > { %p3272_p0 = por %p3271_p13, %p3270_p12 }
 0x29d   : > { %p3268_p11 = pneg %p3267_p10 }
 0x29e   : > { %p3274_p2 = por %p3273_p1, %p3272_p0 }
 0x2a0   : > { %p3275_p4 = pnand %p3274_p2, %p3268_p11 }
 0x2a2   : > { %3278 = shalt.err (!%p3275_p4)
}
 0x2a3   : > { %s3349_s10 = smov 128   ;;  %s3350_s5 = smov 8  }
 0x2a4   : > { %2878 = dma.vmem_to_hbm [thread:$0]  (%p3440_p3), %s4706_s27, 4096, %s4704_s20, %s4713_s21, %s3349_s10, %s3349_s10, %s3350_s5  }
 0x2a5 PF: > { %p2884_p5 = scmp.ge.s32.totalorder %s3345_s30, 2  ;;  %s2535_s7 = sand.u32 1, %s3317_s23  }
 0x2a6   : > { %s2536_s22 = scalar_lea.sflag [#allocation4], %s2535_s7 }
 0x2a7   : > { %p2881_p6 = pnand %p2884_p5, %p3449_p8 }
 0x2a9   : > { %3312 = dma.done.wait (!%p2881_p6), %s2536_s22, 4096  }
 0x2aa   : > { %3314 = vsyncadd (!%p2881_p6), %s2536_s22, 4294963200  ;;  %s20_s30 = sadd.s32 1, %s3345_s30   ;;  %s4774_s23 = smov %s3321_s24 }
 0x2ab   : > { %p17_p7 = scmp.ge.s32.totalorder %s20_s30, 10   ;;  %s4775_s24 = smov %s3325_s25 }
 0x2ac   : > { %s4776_s25 = smov %s3458_s16  ;;  %s4777_s26 = smov %s3337_s28 }
 0x2ad   : > { %s4778_s27 = smov %s3341_s29  ;;  %s4779_s28 = smov %s4782_s8 }
 0x2ae   : > { %s4780_s29 = smov %s4786_s9  ;;  %19 = sbr.rel (!%p17_p7) target bundleno = 7 (0x7), region = 81 }
 0x2b5   :  { %2541 = vsyncpa [#allocation4], 1 }
 0x2b6   :  { %2543 = vsyncpa [#allocation4 + $0x1], 1 }

</bundles_post_ra>
